<compile_context>
chip_gen: v7x
topology: tpu7x:2x2x1
jax: 0.10.0
libtpu: 0.0.40
codegen_flags: <defaults>
</compile_context>

<pallas_src>
import jax
import jax.numpy as jnp
import numpy as np
from jax.experimental import pallas as pl
from jax.experimental.pallas import tpu as pltpu

# ---------------- module hyper-parameters (from EVL.__init__) ----------------
C_BACKBONE3D = 16          # backbone3d.output_dim()  (synthetic)
NECK_FINAL   = 64          # dims[1] in InvResnetFpn3d
HEAD_HIDDEN  = 128         # head_hidden_dim
NUM_CLASS    = 12          # len(self.sem2name)       (synthetic taxonomy)
BBOX_MIN     = 0.1
BBOX_MAX     = 6.0
VOXEL_METERS = 0.04        # backbone3d.voxel_meters  (synthetic)
OFFSET_MAX   = 2.0 * VOXEL_METERS
YAW_MAX      = 1.6
VOXEL_EXTENT = (-1.6, 1.6, -1.6, 1.6, -1.6, 1.6)   # self.ve (synthetic)

# Channel-major output slab (sublane axis = channels, lane axis = voxels):
#   [ neck(64) | occ(1) cent(1) bbox(7) clas(12) pad(11) ]  -> 96 channels
ACT_LANES = 32                       # activation block height (21 used + pad)
OUT_LANES = NECK_FINAL + ACT_LANES   # 96-channel bf16 slab
OCC_OFF  = NECK_FINAL                # 64
CENT_OFF = OCC_OFF + 1               # 65
BBOX_OFF = CENT_OFF + 1              # 66
CLAS_OFF = BBOX_OFF + 7              # 73
# offsets inside the activation block (after the block-diagonal matmul)
A_OCC, A_CENT, A_BBOX, A_CLAS = 0, 1, 2, 9


# ------------------------------- Pallas kernel -------------------------------
def evl_kernel(x_ref, wn_ref, bn_ref, w1_ref, b1_ref, w2_ref, b2_ref,
               sa_ref, sb_ref, sc_ref, out_ref):
    # --- simplified InvResnetFpn3d neck: per-voxel linear C -> 64, ReLU ---
    x = x_ref[0].astype(jnp.bfloat16)                              # (C, T) bf16
    neck = jnp.dot(wn_ref[...], x, preferred_element_type=jnp.float32)
    neck = jnp.maximum(neck + bn_ref[...], 0.0)                    # (64, T) f32
    neck_bf = neck.astype(jnp.bfloat16)                            # single bf16 copy

    # --- four VolumeCNNHeads fused: one hidden + one block-diagonal matmul ---
    h = jnp.dot(w1_ref[...], neck_bf, preferred_element_type=jnp.float32)
    h = jnp.maximum(h + b1_ref[...], 0.0).astype(jnp.bfloat16)     # (512, T) bf16
    logits = jnp.dot(w2_ref[...], h,
                     preferred_element_type=jnp.float32) + b2_ref[...]  # (32, T) f32

    # regular activations via per-channel scale/bias tables (no nested wheres)
    sg = jax.nn.sigmoid(logits)                                    # occ/cent/dims
    th = jnp.tanh(logits)                                          # offsets/yaw
    act = sg * sa_ref[...] + th * sb_ref[...] + sc_ref[...]

    # class softmax over sublanes [A_CLAS, A_CLAS + NUM_CLASS)
    ch = jax.lax.broadcasted_iota(jnp.int32, (ACT_LANES, 1), 0)
    cls_mask = (ch >= A_CLAS) & (ch < A_CLAS + NUM_CLASS)
    m = jnp.max(jnp.where(cls_mask, logits, -jnp.inf), axis=0, keepdims=True)
    e = jnp.where(cls_mask, jnp.exp(logits - m), 0.0)
    s = jnp.sum(e, axis=0, keepdims=True)
    clas = e * pl.reciprocal(s, approx=True)
    act = jnp.where(cls_mask, clas, act)

    # channel-major, lane-dense bf16 writes (sublane offsets 0/64 are 16-aligned)
    out_ref[0, 0:NECK_FINAL, :] = neck_bf
    out_ref[0, NECK_FINAL:OUT_LANES, :] = act.astype(out_ref.dtype)


# ------------------------------- weight packing --------------------------------
def _pack_params(p):
    """Pack 18 per-head tensors into 6 channel-major tensors (bf16 W, f32 b)."""
    Hh = HEAD_HIDDEN
    w1 = jnp.concatenate([p["wo1"], p["wc1"], p["wb1"], p["wk1"]], axis=1)   # (64, 512)
    b1 = jnp.concatenate([p["bo1"], p["bc1"], p["bb1"], p["bk1"]], axis=1)   # (1, 512)
    w2 = jnp.zeros((4 * Hh, ACT_LANES), jnp.float32)                         # block-diag
    w2 = w2.at[0 * Hh:1 * Hh, A_OCC:A_OCC + 1].set(p["wo2"])
    w2 = w2.at[1 * Hh:2 * Hh, A_CENT:A_CENT + 1].set(p["wc2"])
    w2 = w2.at[2 * Hh:3 * Hh, A_BBOX:A_BBOX + 7].set(p["wb2"])
    w2 = w2.at[3 * Hh:4 * Hh, A_CLAS:A_CLAS + NUM_CLASS].set(p["wk2"])
    b2 = jnp.zeros((1, ACT_LANES), jnp.float32)
    b2 = b2.at[:, A_OCC:A_OCC + 1].set(p["bo2"])
    b2 = b2.at[:, A_CENT:A_CENT + 1].set(p["bc2"])
    b2 = b2.at[:, A_BBOX:A_BBOX + 7].set(p["bb2"])
    b2 = b2.at[:, A_CLAS:A_CLAS + NUM_CLASS].set(p["bk2"])
    return {
        "wn": p["wn"].T.astype(jnp.bfloat16),            # (64, 16)
        "bn": p["bn"].reshape(NECK_FINAL, 1),            # (64, 1)
        "w1": w1.T.astype(jnp.bfloat16),                 # (512, 64)
        "b1": b1.reshape(4 * Hh, 1),                     # (512, 1)
        "w2": w2.T.astype(jnp.bfloat16),                 # (32, 512)
        "b2": b2.reshape(ACT_LANES, 1),                  # (32, 1)
    }


def _act_tables():
    """Per-channel (32,1) sigmoid-scale / tanh-scale / bias tables."""
    a = np.zeros((ACT_LANES, 1), np.float32)    # sigmoid scale
    b = np.zeros((ACT_LANES, 1), np.float32)    # tanh scale
    c = np.zeros((ACT_LANES, 1), np.float32)    # additive bias
    a[A_OCC, 0] = 1.0
    a[A_CENT, 0] = 1.0
    a[A_BBOX:A_BBOX + 3, 0] = BBOX_MAX - BBOX_MIN
    c[A_BBOX:A_BBOX + 3, 0] = BBOX_MIN
    b[A_BBOX + 3:A_BBOX + 6, 0] = OFFSET_MAX
    b[A_BBOX + 6, 0] = YAW_MAX
    return jnp.asarray(a), jnp.asarray(b), jnp.asarray(c)


# ------------------------------- tiling heuristics ------------------------------
def _tile_max_for_device():
    """4096 voxels/tile on 128-MiB-VMEM chips (v5e/v6e), 2048 on v7x (64 MiB/TC)."""
    try:
        vmem = pltpu.get_tpu_info().vmem_capacity_bytes
    except Exception:  # conservative fallback off-TPU / older jax
        vmem = 64 * 1024 * 1024
    return 4096 if vmem >= 100 * 1024 * 1024 else 2048


def _pick_tile(nsp, tile_max):
    """Largest power-of-two tile (multiple of 128, <= tile_max); prefer exact
    divisors of nsp (no padding) keeping >= 2 grid steps when possible."""
    candidates = []
    t = tile_max
    while t >= 128:
        candidates.append(t)
        t //= 2
    for t in candidates:                       # exact divisor, >= 2 grid steps
        if nsp % t == 0 and nsp // t >= 2:
            return t
    for t in candidates:                       # exact divisor, single step
        if nsp % t == 0:
            return t
    for t in candidates:                       # padding fallback
        if t <= nsp:
            return t
    return 128


# ---------------------------------- wrapper ------------------------------------
def evl_forward(voxel_feats, params, tile_n=None):
    """voxel_feats: [B, C, D, H, W] float32 (NCDHW, like PyTorch).

    Channel-major end to end: the only XLA-side ops around the kernel are a
    free reshape on input and channel-slice + reshape on output (no transposes).
    Dense outputs are bfloat16 (the kernel writes a bf16 slab).
    """
    B, C, D, H, W = voxel_feats.shape
    assert C == C_BACKBONE3D
    nsp = D * H * W

    packed = _pack_params(params)
    sa, sb, sc = _act_tables()

    # NCDHW -> (B, C, N): pure reshape; bf16 cast happens inside the kernel.
    x = voxel_feats.reshape(B, C, nsp)

    if tile_n is None:
        tile_n = _pick_tile(nsp, _tile_max_for_device())
    nsp_pad = -(-nsp // tile_n) * tile_n
    if nsp_pad != nsp:
        x = jnp.pad(x, ((0, 0), (0, 0), (0, nsp_pad - nsp)))

    weight_args = [packed["wn"], packed["bn"], packed["w1"], packed["b1"],
                   packed["w2"], packed["b2"], sa, sb, sc]
    in_specs = [pl.BlockSpec((1, C, tile_n), lambda b, i: (b, 0, i))]
    # constant index maps -> weight tiles stay resident across grid steps
    in_specs += [pl.BlockSpec(tuple(w.shape), lambda b, i: (0, 0)) for w in weight_args]

    vmem_limit = (64 if tile_n >= 4096 else 32) * 1024 * 1024

    out = pl.pallas_call(
        evl_kernel,
        out_shape=jax.ShapeDtypeStruct((B, OUT_LANES, nsp_pad), jnp.bfloat16),
        grid_spec=pltpu.PrefetchScalarGridSpec(
            num_scalar_prefetch=0,
            grid=(B, nsp_pad // tile_n),
            in_specs=in_specs,
            out_specs=pl.BlockSpec((1, OUT_LANES, tile_n), lambda b, i: (b, 0, i)),
        ),
        compiler_params=pltpu.CompilerParams(
            dimension_semantics=("parallel", "parallel"),
            vmem_limit_bytes=vmem_limit,
        ),
    )(x, *weight_args)

    def take(c0, ch):
        # channel slice + reshape only — no transposes on the output path
        return out[:, c0:c0 + ch, :nsp].reshape(B, ch, D, H, W)

    neck = take(0, NECK_FINAL)
    return {
        "neck/occ_feat": neck,
        "neck/obb_feat": neck,
        "occ_pr":  take(OCC_OFF, 1),
        "cent_pr": take(CENT_OFF, 1),
        "bbox_pr": take(BBOX_OFF, 7),
        "clas_pr": take(CLAS_OFF, NUM_CLASS),
        "voxel_extent": jnp.asarray(VOXEL_EXTENT, dtype=jnp.float32),
    }


# ------------------------- deterministic parameter init ------------------------
def init_params(key):
    ks = jax.random.split(key, 16)

    def lin(k, fan_in, fan_out):
        return (jax.random.normal(k, (fan_in, fan_out), jnp.float32)
                / np.sqrt(fan_in)).astype(jnp.float32)

    return {
        "wn":  lin(ks[0], C_BACKBONE3D, NECK_FINAL),
        "bn":  jnp.zeros((1, NECK_FINAL), jnp.float32),
        # Occupancy head
        "wo1": lin(ks[1], NECK_FINAL, HEAD_HIDDEN),
        "bo1": jnp.zeros((1, HEAD_HIDDEN), jnp.float32),
        "wo2": lin(ks[2], HEAD_HIDDEN, 1),
        "bo2": jnp.zeros((1, 1), jnp.float32),
        # Centerness head (final bias init = -5, per EVL.__init__)
        "wc1": lin(ks[3], NECK_FINAL, HEAD_HIDDEN),
        "bc1": jnp.zeros((1, HEAD_HIDDEN), jnp.float32),
        "wc2": lin(ks[4], HEAD_HIDDEN, 1),
        "bc2": jnp.full((1, 1), -5.0, jnp.float32),
        # BoundingBox head
        "wb1": lin(ks[5], NECK_FINAL, HEAD_HIDDEN),
        "bb1": jnp.zeros((1, HEAD_HIDDEN), jnp.float32),
        "wb2": lin(ks[6], HEAD_HIDDEN, 7),
        "bb2": jnp.zeros((1, 7), jnp.float32),
        # Class head
        "wk1": lin(ks[7], NECK_FINAL, HEAD_HIDDEN),
        "bk1": jnp.zeros((1, HEAD_HIDDEN), jnp.float32),
        "wk2": lin(ks[8], HEAD_HIDDEN, NUM_CLASS),
        "bk2": jnp.zeros((1, NUM_CLASS), jnp.float32),
    }


# ------------------------------ pure-JAX references ----------------------------
def evl_reference_f32(voxel_feats, p):
    """Un-fused f32 semantic reference (matches the PyTorch module math)."""
    B, C, D, H, W = voxel_feats.shape
    x = jnp.transpose(voxel_feats, (0, 2, 3, 4, 1)).reshape(-1, C)
    neck = jnp.maximum(x @ p["wn"] + p["bn"], 0.0)

    def head(w1, b1, w2, b2):
        h = jnp.maximum(neck @ w1 + b1, 0.0)
        return h @ w2 + b2

    occ = jax.nn.sigmoid(head(p["wo1"], p["bo1"], p["wo2"], p["bo2"]))
    cent = jax.nn.sigmoid(head(p["wc1"], p["bc1"], p["wc2"], p["bc2"]))
    braw = head(p["wb1"], p["bb1"], p["wb2"], p["bb2"])
    bbox = jnp.concatenate([
        (BBOX_MAX - BBOX_MIN) * jax.nn.sigmoid(braw[:, 0:3]) + BBOX_MIN,
        OFFSET_MAX * jnp.tanh(braw[:, 3:6]),
        YAW_MAX * jnp.tanh(braw[:, 6:7]),
    ], axis=-1)
    clas = jax.nn.softmax(head(p["wk1"], p["bk1"], p["wk2"], p["bk2"]), axis=-1)

    def to_ncdhw(a, ch):
        return jnp.transpose(a.reshape(B, D, H, W, ch), (0, 4, 1, 2, 3))

    return {"occ_pr": to_ncdhw(occ, 1), "cent_pr": to_ncdhw(cent, 1),
            "bbox_pr": to_ncdhw(bbox, 7), "clas_pr": to_ncdhw(clas, NUM_CLASS)}


def evl_reference_packed_bf16(voxel_feats, packed, sa, sb, sc):
    """Channel-major reference with the same fused/packed weights, bf16 matmul
    operands and bf16 output rounding as the kernel."""
    B, C, D, H, W = voxel_feats.shape
    x = voxel_feats.reshape(B, C, -1).astype(jnp.bfloat16)          # (B, C, N)
    neck = jnp.maximum(
        jnp.einsum("oc,bcn->bon", packed["wn"], x,
                   preferred_element_type=jnp.float32) + packed["bn"], 0.0)
    neck_bf = neck.astype(jnp.bfloat16)
    h = jnp.maximum(
        jnp.einsum("hc,bcn->bhn", packed["w1"], neck_bf,
                   preferred_element_type=jnp.float32) + packed["b1"], 0.0
    ).astype(jnp.bfloat16)
    logits = jnp.einsum("oh,bhn->bon", packed["w2"], h,
                        preferred_element_type=jnp.float32) + packed["b2"]

    sg = jax.nn.sigmoid(logits)
    th = jnp.tanh(logits)
    reg = sg * sa + th * sb + sc
    clas = jax.nn.softmax(logits[:, A_CLAS:A_CLAS + NUM_CLASS, :], axis=1)

    def rnd(a, ch):                                   # mimic bf16 slab writeback
        return a.astype(jnp.bfloat16).astype(jnp.float32).reshape(B, ch, D, H, W)

    return {
        "neck":    neck_bf.astype(jnp.float32).reshape(B, NECK_FINAL, D, H, W),
        "occ_pr":  rnd(sg[:, A_OCC:A_OCC + 1, :], 1),
        "cent_pr": rnd(sg[:, A_CENT:A_CENT + 1, :], 1),
        "bbox_pr": rnd(reg[:, A_BBOX:A_BBOX + 7, :], 7),
        "clas_pr": rnd(clas, NUM_CLASS),
    }


# ---------------------------------- main ----------------------------------------
if __name__ == "__main__":
    key = jax.random.PRNGKey(0)
    k_x, k_p = jax.random.split(key)

    B, D, H, W = 2, 8, 8, 8                       # 2 x 512 voxels
    voxel_feats = jax.random.normal(
        k_x, (B, C_BACKBONE3D, D, H, W), jnp.float32)
    params = init_params(k_p)

    out = evl_forward(voxel_feats, params)
    out = jax.block_until_ready(out)

    def f32(a):
        return np.asarray(a).astype(np.float32)

    # Tight check vs bf16-matched packed reference (same fused math / rounding).
    packed = _pack_params(params)
    sa, sb, sc = _act_tables()
    ref_m = evl_reference_packed_bf16(voxel_feats, packed, sa, sb, sc)
    np.testing.assert_allclose(f32(out["neck/occ_feat"]), f32(ref_m["neck"]),
                               rtol=2e-2, atol=2e-2)
    for name in ("occ_pr", "cent_pr", "bbox_pr", "clas_pr"):
        np.testing.assert_allclose(f32(out[name]), f32(ref_m[name]),
                                   rtol=2e-2, atol=2e-2)

    # Loose semantic check vs the un-fused f32 reference (bf16 matmuls, bf16 slab).
    ref32 = evl_reference_f32(voxel_feats, params)
    for name in ("occ_pr", "cent_pr", "bbox_pr", "clas_pr"):
        np.testing.assert_allclose(f32(out[name]), f32(ref32[name]),
                                   rtol=6e-2, atol=6e-2)

    assert out["occ_pr"].shape == (B, 1, D, H, W)
    assert out["cent_pr"].shape == (B, 1, D, H, W)
    assert out["bbox_pr"].shape == (B, 7, D, H, W)
    assert out["clas_pr"].shape == (B, NUM_CLASS, D, H, W)
    assert out["neck/occ_feat"].shape == (B, NECK_FINAL, D, H, W)

    print("KERNEL_OK")
</pallas_src>

<mosaic_0001>
module attributes {stable_mosaic.version = 11 : i64} {
  func.func @evl_kernel(%arg0: i32, %arg1: i32, %arg2: memref<1x16x256xf32, #tpu.memory_space<vmem>>, %arg3: memref<64x16xbf16, #tpu.memory_space<vmem>>, %arg4: memref<64x1xf32, #tpu.memory_space<vmem>>, %arg5: memref<512x64xbf16, #tpu.memory_space<vmem>>, %arg6: memref<512x1xf32, #tpu.memory_space<vmem>>, %arg7: memref<32x512xbf16, #tpu.memory_space<vmem>>, %arg8: memref<32x1xf32, #tpu.memory_space<vmem>>, %arg9: memref<32x1xf32, #tpu.memory_space<vmem>>, %arg10: memref<32x1xf32, #tpu.memory_space<vmem>>, %arg11: memref<32x1xf32, #tpu.memory_space<vmem>>, %arg12: memref<1x96x256xbf16, #tpu.memory_space<vmem>>) attributes {dimension_semantics = [#tpu.dimension_semantics<parallel>, #tpu.dimension_semantics<parallel>], iteration_bounds = array<i64: 2, 2>, scalar_prefetch = 0 : i64, scratch_operands = 0 : i64, tpu.core_type = #tpu.core_type<tc>, window_params = [{transform_indices = @transform_0, window_bounds = array<i64: 1, 16, 256>}, {pipeline_mode = #tpu.pipeline_mode<synchronous>, transform_indices = @transform_1, window_bounds = array<i64: 64, 16>}, {pipeline_mode = #tpu.pipeline_mode<synchronous>, transform_indices = @transform_2, window_bounds = array<i64: 64, 1>}, {pipeline_mode = #tpu.pipeline_mode<synchronous>, transform_indices = @transform_3, window_bounds = array<i64: 512, 64>}, {pipeline_mode = #tpu.pipeline_mode<synchronous>, transform_indices = @transform_4, window_bounds = array<i64: 512, 1>}, {pipeline_mode = #tpu.pipeline_mode<synchronous>, transform_indices = @transform_5, window_bounds = array<i64: 32, 512>}, {pipeline_mode = #tpu.pipeline_mode<synchronous>, transform_indices = @transform_6, window_bounds = array<i64: 32, 1>}, {pipeline_mode = #tpu.pipeline_mode<synchronous>, transform_indices = @transform_7, window_bounds = array<i64: 32, 1>}, {pipeline_mode = #tpu.pipeline_mode<synchronous>, transform_indices = @transform_8, window_bounds = array<i64: 32, 1>}, {pipeline_mode = #tpu.pipeline_mode<synchronous>, transform_indices = @transform_9, window_bounds = array<i64: 32, 1>}, {transform_indices = @transform_10, window_bounds = array<i64: 1, 96, 256>}]} {
    %c0 = arith.constant 0 : index
    %c0_0 = arith.constant 0 : index
    %c0_1 = arith.constant 0 : index
    %0 = vector.load %arg2[%c0, %c0_0, %c0_1] : memref<1x16x256xf32, #tpu.memory_space<vmem>>, vector<1x16x256xf32>
    %1 = vector.shape_cast %0 : vector<1x16x256xf32> to vector<16x256xf32>
    %2 = arith.truncf %1 : vector<16x256xf32> to vector<16x256xbf16>
    %c0_2 = arith.constant 0 : index
    %c0_3 = arith.constant 0 : index
    %3 = vector.load %arg3[%c0_2, %c0_3] : memref<64x16xbf16, #tpu.memory_space<vmem>>, vector<64x16xbf16>
    %cst = arith.constant dense<0.000000e+00> : vector<64x256xf32>
    %4 = tpu.matmul %3, %2, %cst {dimension_numbers = #tpu.dot_dimension_numbers<[1], [0], [0], [1], [0, 0, 1, 1], [], []>} : vector<64x16xbf16>, vector<16x256xbf16>, vector<64x256xf32> -> vector<64x256xf32>
    %c0_4 = arith.constant 0 : index
    %c0_5 = arith.constant 0 : index
    %5 = vector.load %arg4[%c0_4, %c0_5] : memref<64x1xf32, #tpu.memory_space<vmem>>, vector<64x1xf32>
    %6 = vector.broadcast %5 : vector<64x1xf32> to vector<64x256xf32>
    %7 = arith.addf %4, %6 : vector<64x256xf32>
    %cst_6 = arith.constant 0.000000e+00 : f32
    %8 = vector.broadcast %cst_6 : f32 to vector<64x256xf32>
    %9 = arith.maximumf %7, %8 : vector<64x256xf32>
    %10 = arith.truncf %9 : vector<64x256xf32> to vector<64x256xbf16>
    %c0_7 = arith.constant 0 : index
    %c0_8 = arith.constant 0 : index
    %11 = vector.load %arg5[%c0_7, %c0_8] : memref<512x64xbf16, #tpu.memory_space<vmem>>, vector<512x64xbf16>
    %cst_9 = arith.constant dense<0.000000e+00> : vector<512x256xf32>
    %12 = tpu.matmul %11, %10, %cst_9 {dimension_numbers = #tpu.dot_dimension_numbers<[1], [0], [0], [1], [0, 0, 1, 1], [], []>} : vector<512x64xbf16>, vector<64x256xbf16>, vector<512x256xf32> -> vector<512x256xf32>
    %c0_10 = arith.constant 0 : index
    %c0_11 = arith.constant 0 : index
    %13 = vector.load %arg6[%c0_10, %c0_11] : memref<512x1xf32, #tpu.memory_space<vmem>>, vector<512x1xf32>
    %14 = vector.broadcast %13 : vector<512x1xf32> to vector<512x256xf32>
    %15 = arith.addf %12, %14 : vector<512x256xf32>
    %cst_12 = arith.constant 0.000000e+00 : f32
    %16 = vector.broadcast %cst_12 : f32 to vector<512x256xf32>
    %17 = arith.maximumf %15, %16 : vector<512x256xf32>
    %18 = arith.truncf %17 : vector<512x256xf32> to vector<512x256xbf16>
    %c0_13 = arith.constant 0 : index
    %c0_14 = arith.constant 0 : index
    %19 = vector.load %arg7[%c0_13, %c0_14] : memref<32x512xbf16, #tpu.memory_space<vmem>>, vector<32x512xbf16>
    %cst_15 = arith.constant dense<0.000000e+00> : vector<32x256xf32>
    %20 = tpu.matmul %19, %18, %cst_15 {dimension_numbers = #tpu.dot_dimension_numbers<[1], [0], [0], [1], [0, 0, 1, 1], [], []>} : vector<32x512xbf16>, vector<512x256xbf16>, vector<32x256xf32> -> vector<32x256xf32>
    %c0_16 = arith.constant 0 : index
    %c0_17 = arith.constant 0 : index
    %21 = vector.load %arg8[%c0_16, %c0_17] : memref<32x1xf32, #tpu.memory_space<vmem>>, vector<32x1xf32>
    %22 = vector.broadcast %21 : vector<32x1xf32> to vector<32x256xf32>
    %23 = arith.addf %20, %22 : vector<32x256xf32>
    %24 = arith.negf %23 : vector<32x256xf32>
    %25 = math.exp %24 : vector<32x256xf32>
    %cst_18 = arith.constant 1.000000e+00 : f32
    %26 = vector.broadcast %cst_18 : f32 to vector<32x256xf32>
    %27 = arith.addf %26, %25 : vector<32x256xf32>
    %28 = arith.divf %26, %27 : vector<32x256xf32>
    %29 = math.tanh %23 : vector<32x256xf32>
    %c0_19 = arith.constant 0 : index
    %c0_20 = arith.constant 0 : index
    %30 = vector.load %arg9[%c0_19, %c0_20] : memref<32x1xf32, #tpu.memory_space<vmem>>, vector<32x1xf32>
    %31 = vector.broadcast %30 : vector<32x1xf32> to vector<32x256xf32>
    %32 = arith.mulf %28, %31 : vector<32x256xf32>
    %c0_21 = arith.constant 0 : index
    %c0_22 = arith.constant 0 : index
    %33 = vector.load %arg10[%c0_21, %c0_22] : memref<32x1xf32, #tpu.memory_space<vmem>>, vector<32x1xf32>
    %34 = vector.broadcast %33 : vector<32x1xf32> to vector<32x256xf32>
    %35 = arith.mulf %29, %34 : vector<32x256xf32>
    %36 = arith.addf %32, %35 : vector<32x256xf32>
    %c0_23 = arith.constant 0 : index
    %c0_24 = arith.constant 0 : index
    %37 = vector.load %arg11[%c0_23, %c0_24] : memref<32x1xf32, #tpu.memory_space<vmem>>, vector<32x1xf32>
    %38 = vector.broadcast %37 : vector<32x1xf32> to vector<32x256xf32>
    %39 = arith.addf %36, %38 : vector<32x256xf32>
    %40 = tpu.iota {dimensions = array<i32: 0>} : vector<32x1xi32>
    %c9_i32 = arith.constant 9 : i32
    %41 = vector.broadcast %c9_i32 : i32 to vector<32x1xi32>
    %42 = arith.cmpi sge, %40, %41 : vector<32x1xi32>
    %c21_i32 = arith.constant 21 : i32
    %43 = vector.broadcast %c21_i32 : i32 to vector<32x1xi32>
    %44 = arith.cmpi slt, %40, %43 : vector<32x1xi32>
    %45 = arith.andi %42, %44 : vector<32x1xi1>
    %cst_25 = arith.constant 0xFF800000 : f32
    %46 = vector.shape_cast %45 : vector<32x1xi1> to vector<32x1xi1>
    %47 = vector.broadcast %46 : vector<32x1xi1> to vector<32x256xi1>
    %48 = vector.broadcast %cst_25 : f32 to vector<32x256xf32>
    %49 = arith.select %47, %23, %48 : vector<32x256xi1>, vector<32x256xf32>
    %cst_26 = arith.constant dense<0xFF800000> : vector<256xf32>
    %50 = vector.multi_reduction <maximumf>, %49, %cst_26 [0] : vector<32x256xf32> to vector<256xf32>
    %51 = vector.shape_cast %50 : vector<256xf32> to vector<1x256xf32>
    %52 = vector.broadcast %51 : vector<1x256xf32> to vector<32x256xf32>
    %53 = arith.subf %23, %52 : vector<32x256xf32>
    %54 = math.exp %53 : vector<32x256xf32>
    %cst_27 = arith.constant 0.000000e+00 : f32
    %55 = vector.shape_cast %45 : vector<32x1xi1> to vector<32x1xi1>
    %56 = vector.broadcast %55 : vector<32x1xi1> to vector<32x256xi1>
    %57 = vector.broadcast %cst_27 : f32 to vector<32x256xf32>
    %58 = arith.select %56, %54, %57 : vector<32x256xi1>, vector<32x256xf32>
    %cst_28 = arith.constant dense<0.000000e+00> : vector<256xf32>
    %59 = vector.multi_reduction <add>, %58, %cst_28 [0] : vector<32x256xf32> to vector<256xf32>
    %60 = vector.shape_cast %59 : vector<256xf32> to vector<1x256xf32>
    %61 = tpu.reciprocal %60 {approx = true} : vector<1x256xf32> -> vector<1x256xf32>
    %62 = vector.broadcast %61 : vector<1x256xf32> to vector<32x256xf32>
    %63 = arith.mulf %58, %62 : vector<32x256xf32>
    %64 = vector.shape_cast %45 : vector<32x1xi1> to vector<32x1xi1>
    %65 = vector.broadcast %64 : vector<32x1xi1> to vector<32x256xi1>
    %66 = arith.select %65, %63, %39 : vector<32x256xi1>, vector<32x256xf32>
    %c0_29 = arith.constant 0 : index
    %c0_30 = arith.constant 0 : index
    %c0_31 = arith.constant 0 : index
    %67 = vector.load %arg12[%c0_29, %c0_30, %c0_31] : memref<1x96x256xbf16, #tpu.memory_space<vmem>>, vector<1x64x256xbf16>
    %68 = vector.shape_cast %67 : vector<1x64x256xbf16> to vector<64x256xbf16>
    %69 = vector.shape_cast %10 : vector<64x256xbf16> to vector<1x64x256xbf16>
    tpu.vector_store %arg12[%c0_29, %c0_30, %c0_31], %69 {strides = array<i32>} : memref<1x96x256xbf16, #tpu.memory_space<vmem>>, vector<1x64x256xbf16>,
    %70 = arith.truncf %66 : vector<32x256xf32> to vector<32x256xbf16>
    %c0_32 = arith.constant 0 : index
    %c64 = arith.constant 64 : index
    %c0_33 = arith.constant 0 : index
    %71 = vector.load %arg12[%c0_32, %c64, %c0_33] : memref<1x96x256xbf16, #tpu.memory_space<vmem>>, vector<1x32x256xbf16>
    %72 = vector.shape_cast %71 : vector<1x32x256xbf16> to vector<32x256xbf16>
    %73 = vector.shape_cast %70 : vector<32x256xbf16> to vector<1x32x256xbf16>
    tpu.vector_store %arg12[%c0_32, %c64, %c0_33], %73 {strides = array<i32>} : memref<1x96x256xbf16, #tpu.memory_space<vmem>>, vector<1x32x256xbf16>,
    return
  }
  func.func @transform_0(%arg0: i32, %arg1: i32) -> (i32, i32, i32) {
    %c0_i32 = arith.constant 0 : i32
    %c0_i32_0 = arith.constant 0 : i32
    return %arg0, %c0_i32, %arg1 : i32, i32, i32
  }
  func.func @transform_1(%arg0: i32, %arg1: i32) -> (i32, i32) {
    %c0_i32 = arith.constant 0 : i32
    %c0_i32_0 = arith.constant 0 : i32
    %c0_i32_1 = arith.constant 0 : i32
    return %c0_i32, %c0_i32_0 : i32, i32
  }
  func.func @transform_2(%arg0: i32, %arg1: i32) -> (i32, i32) {
    %c0_i32 = arith.constant 0 : i32
    %c0_i32_0 = arith.constant 0 : i32
    %c0_i32_1 = arith.constant 0 : i32
    return %c0_i32, %c0_i32_0 : i32, i32
  }
  func.func @transform_3(%arg0: i32, %arg1: i32) -> (i32, i32) {
    %c0_i32 = arith.constant 0 : i32
    %c0_i32_0 = arith.constant 0 : i32
    %c0_i32_1 = arith.constant 0 : i32
    return %c0_i32, %c0_i32_0 : i32, i32
  }
  func.func @transform_4(%arg0: i32, %arg1: i32) -> (i32, i32) {
    %c0_i32 = arith.constant 0 : i32
    %c0_i32_0 = arith.constant 0 : i32
    %c0_i32_1 = arith.constant 0 : i32
    return %c0_i32, %c0_i32_0 : i32, i32
  }
  func.func @transform_5(%arg0: i32, %arg1: i32) -> (i32, i32) {
    %c0_i32 = arith.constant 0 : i32
    %c0_i32_0 = arith.constant 0 : i32
    %c0_i32_1 = arith.constant 0 : i32
    return %c0_i32, %c0_i32_0 : i32, i32
  }
  func.func @transform_6(%arg0: i32, %arg1: i32) -> (i32, i32) {
    %c0_i32 = arith.constant 0 : i32
    %c0_i32_0 = arith.constant 0 : i32
    %c0_i32_1 = arith.constant 0 : i32
    return %c0_i32, %c0_i32_0 : i32, i32
  }
  func.func @transform_7(%arg0: i32, %arg1: i32) -> (i32, i32) {
    %c0_i32 = arith.constant 0 : i32
    %c0_i32_0 = arith.constant 0 : i32
    %c0_i32_1 = arith.constant 0 : i32
    return %c0_i32, %c0_i32_0 : i32, i32
  }
  func.func @transform_8(%arg0: i32, %arg1: i32) -> (i32, i32) {
    %c0_i32 = arith.constant 0 : i32
    %c0_i32_0 = arith.constant 0 : i32
    %c0_i32_1 = arith.constant 0 : i32
    return %c0_i32, %c0_i32_0 : i32, i32
  }
  func.func @transform_9(%arg0: i32, %arg1: i32) -> (i32, i32) {
    %c0_i32 = arith.constant 0 : i32
    %c0_i32_0 = arith.constant 0 : i32
    %c0_i32_1 = arith.constant 0 : i32
    return %c0_i32, %c0_i32_0 : i32, i32
  }
  func.func @transform_10(%arg0: i32, %arg1: i32) -> (i32, i32, i32) {
    %c0_i32 = arith.constant 0 : i32
    %c0_i32_0 = arith.constant 0 : i32
    return %arg0, %c0_i32, %arg1 : i32, i32, i32
  }
}

</mosaic_0001>

<bundles_post_ra>
// kernel: tpu_custom_call.1
= control target key start
LH: loop header
LB: loop body
LE: loop exit
PB: predicated region body
PF: predicated region fallthrough
CT: control target
= control target key end

     0   :  { %15 = vsyncpa [#allocation4], 0  ;;  %s3839_s0 = inlined_call_operand.vmem [shape: f32[2,16,512], index: 0, kind: input, shape index: {}]   ;;  %s3840_s1 = inlined_call_operand.vmem [shape: bf16[64,16], index: 1, kind: input, shape index: {}]   ;;  %s3841_s2 = inlined_call_operand.vmem [shape: f32[64,1], index: 2, kind: input, shape index: {}]   ;;  %s3842_s3 = inlined_call_operand.vmem [shape: bf16[512,64], index: 3, kind: input, shape index: {}]   ;;  %s3843_s4 = inlined_call_operand.vmem [shape: f32[512,1], index: 4, kind: input, shape index: {}]   ;;  %s3844_s5 = inlined_call_operand.vmem [shape: bf16[32,512], index: 5, kind: input, shape index: {}]   ;;  %s3845_s6 = inlined_call_operand.vmem [shape: f32[32,1], index: 6, kind: input, shape index: {}]   ;;  %s3846_s7 = inlined_call_operand.vmem [shape: f32[32,1], index: 7, kind: input, shape index: {}]   ;;  %s3847_s8 = inlined_call_operand.vmem [shape: f32[32,1], index: 8, kind: input, shape index: {}]   ;;  %s3848_s9 = inlined_call_operand.vmem [shape: f32[32,1], index: 9, kind: input, shape index: {}]   ;;  %s3849_s10 = inlined_call_operand.hbm [shape: bf16[2,96,512], index: 10, kind: output, shape index: {}]  }
   0x1   :  { %17 = vsyncpa [#allocation4 + $0x1], 0  ;;  %s2974_s13 = smov 0   ;;  %s2976_s14 = smov 0  }
   0x2   :  { %s2978_s15 = smov 0   ;;  %s2980_s16 = smov 0  }
   0x3   :  { %s2982_s17 = smov 0   ;;  %s2984_s18 = smov 0  }
   0x4   :  { %s2986_s19 = smov 0   ;;  %s2988_s20 = smov 0  }
   0x5 LB: > { %3854 = sst [smem:[#allocation6_spill]] %s2884_s13  ;;  %s2481_s21 = sadd.s32 4294967295, %s2912_s20   ;;  %s2912_s20 = sphi %s2988_s20, %s23_s20   ;;  %s2908_s19 = sphi %s2986_s19, %s3871_s19   ;;  %s2904_s18 = sphi %s2984_s18, %s3870_s18   ;;  %s2900_s17 = sphi %s2982_s17, %s3869_s17   ;;  %s2896_s16 = sphi %s2980_s16, %s3868_s16   ;;  %s2892_s15 = sphi %s2978_s15, %s3867_s15   ;;  %s2888_s14 = sphi %s2976_s14, %s3866_s14   ;;  %s2884_s13 = sphi %s2974_s13, %s3865_s13  }
   0x6   : > { %s2482_s22 = sadd.s32 4294967294, %s2912_s20   ;;  %s32_s23 = sadd.s32 1, %s2904_s18 }
   0x7   : > { %p33_p0 = scmp.ge.s32.totalorder %s32_s23, 2  ;;  %s35_s24 = sadd.s32 1, %s2908_s19 }
   0x8   : > { %p51_p1 = scmp.ne.s32.totalorder %s2892_s15, %s2888_s14  ;;  %p52_p2 = scmp.eq.s32.totalorder %s2912_s20, 0 }
   0x9   : > { %s3873_s23 = smov (%p33_p0, %s32_s23), 0  ;;  %s3875_s24 = smov (!%p33_p0, %s35_s24), %s2908_s19 }
   0xa   : > { %3855 = sst [smem:[#allocation7_spill]] %s3873_s23  ;;  %s40_s25 = ssub.s32 %s2904_s18, %s3873_s23 }
   0xb   : > { %p3026_p3 = por %p52_p2, %p51_p1  ;;  %p37_p4 = scmp.ge.s32.totalorder %s3875_s24, 2 }
   0xc   : > { %p272_p5 = scmp.eq.s32.totalorder %s2481_s21, 3  ;;  %p277_p6 = scmp.ne.s32.totalorder %s2888_s14, %s2884_s13 }
   0xd   : > { %p278_p7 = scmp.eq.s32.totalorder %s2482_s22, 3  ;;  %s3877_s24 = smov (%p37_p4, %s3875_s24), 0 }
   0xe   : > { %3857 = sst [smem:[#allocation8_spill]] %s3877_s24  ;;  %p3034_p8 = por %p272_p5, %p51_p1 }
   0xf   : > { %p3038_p9 = por %p278_p7, %p277_p6  ;;  %s39_s29 = ssub.s32 %s2908_s19, %s3877_s24 }
  0x10   : > { %s41_s30 = sor.u32 %s40_s25, %s39_s29  ;;  %s44_s11 = sadd.s32 1, %s2892_s15 }
  0x11   : > { %s3859_s28 = scalar_select %p3038_p9, 1, 0 }
  0x12   : > { %p42_p10 = scmp.eq.s32.totalorder %s41_s30, 0  ;;  %p2484_p11 = scmp.ge.s32.totalorder %s2912_s20, 4 }
  0x13   : > { %3860 = sst [smem:[#allocation9_spill]] %s3859_s28 }
  0x14   : > { %s3046_s12 = scalar_select %p42_p10, %s2892_s15, %s44_s11  }
  0x15   : > { %321 = sbr.rel (%p2484_p11) target bundleno = 37 (0x25), region = 52 }
  0x1c   : > { %324 = sbr.rel (!%p3026_p3) target bundleno = 37 (0x25), region = 56  ;;  %s326_s21 = sand.u32 (%p3026_p3), 1, %s2892_s15  }
  0x1d   : > { %s2486_s22 = sshll.u32 (%p3026_p3), %s2904_s18, 1  ;;  %s2485_s23 = sshll.u32 (%p3026_p3), %s326_s21, 5 }
  0x1e   : > { %s2487_s13 = sshll.u32 (%p3026_p3), %s2908_s19, 3  ;;  %s328_s11 = scalar_lea.vmem (%p3026_p3), [#allocation2], %s2485_s23 }
  0x1f   : > { %s331_s28 = sadd.s32 (%p3026_p3), %s2487_s13, %s2486_s22 }
  0x20   : > { %s2488_s24 = sshll.u32 (%p3026_p3), %s331_s28, 3 }
  0x21   : > { %s333_s30 = scalar_lea.vmem (%p3026_p3), %s3839_s0, %s2488_s24 }
  0x22   : > { %v346_v0 = vld [vmem:[%s333_s30] sm:$0xff] (%p3026_p3)  ;;  %v348_v1 = vld [vmem:[%s333_s30 + $0x8] sm:$0xff] (%p3026_p3) }
  0x23   : > { %v350_v2 = vld [vmem:[%s333_s30 + $0x20] sm:$0xff]  ;;  %347 = vst [vmem:[%s328_s11] sm:$0xff] %v346_v0  ;;  %349 = vst [vmem:[%s328_s11 + $0x8] sm:$0xff] %v348_v1  ;;  %v352_v3 = vld [vmem:[%s333_s30 + $0x28] sm:$0xff] }
  0x24   : > { %351 = vst [vmem:[%s328_s11 + $0x10] sm:$0xff] %v350_v2  ;;  %353 = vst [vmem:[%s328_s11 + $0x18] sm:$0xff] %v352_v3 }
  0x25 PF: > { %p2489_p12 = scmp.ge.s32.totalorder %s2912_s20, 1  ;;  %p358_p13 = scmp.lt.s32.totalorder %s2912_s20, 5 }
  0x27   : > { %p359_p0 = pnand %p2489_p12, %p358_p13 }
  0x28   : > { %v421_v4 = vld [vmem:[%s3841_s2 + $0x10] sm:$0xff] (!%p359_p0)  ;;  %v419_v5 = vld [vmem:[%s3841_s2] sm:$0xff] (!%p359_p0)  ;;  %s3066_s28 = sand.u32 (!%p359_p0), 1, %s2888_s14   ;;  %v2914_v6 = vmov (!%p359_p0), 0   ;;  %v422_v7 = vld [vmem:[%s3841_s2 + $0x18] sm:$0xff] (!%p359_p0)  ;;  %vm487_vm0 = vcmask (!%p359_p0), 130048  }
  0x29   : > { %362 = sbr.rel (%p359_p0) target bundleno = 1003 (0x3eb), region = 79  ;;  %2709 = vset.pattern.permute.xlu1 (!%p359_p0), %v2914_v6  ;;  %2708 = vset.pattern.permute.xlu0 (!%p359_p0), %v2914_v6  ;;  %s2490_s25 = sshll.u32 (!%p359_p0), %s3066_s28, 5  ;;  %v420_v8 = vld [vmem:[%s3841_s2 + $0x8] sm:$0xff] (!%p359_p0)  ;;  %v423_v16 = vld [vmem:[%s3841_s2 + $0x20] sm:$0xff] (!%p359_p0)  ;;  %v426_v18 = vld [vmem:[%s3841_s2 + $0x38] sm:$0xff] (!%p359_p0)  ;;  %vm1205_vm1 = vcmask (!%p359_p0), 523264  }
  0x2a   : > { %439 = vperm.xlu1 (!%p359_p0), %2709, %v421_v4   ;;  %429 = vperm.xlu0 (!%p359_p0), %2708, %v419_v5   ;;  %s367_s11 = scalar_lea.vmem (!%p359_p0), [#allocation2], %s2490_s25  ;;  %v424_v15 = vld [vmem:[%s3841_s2 + $0x28] sm:$0xff] (!%p359_p0)  ;;  %v2710_v17 = vld [vmem:[%s3840_s1] sm:$0xff] (!%p359_p0)   ;;  %v425_v19 = vld [vmem:[%s3841_s2 + $0x30] sm:$0xff] (!%p359_p0)  ;;  %s2631_s25 = smul.u32 (!%p359_p0), 96, %s3066_s28 }
  0x2b   : > { %v406_v9 = vld [vmem:[%s367_s11 + $0x8] sm:$0xff] (!%p359_p0)  ;;  %v408_v10 = vld [vmem:[%s367_s11 + $0x18] sm:$0xff] (!%p359_p0)  ;;  %v405_v11 = vld [vmem:[%s367_s11] sm:$0xff] (!%p359_p0)  ;;  %532 = vmatprep.mubr.bf16.mxu0 (!%p359_p0), %v2914_v6  ;;  %1424 = vmatprep.mubr.bf16.mxu1 (!%p359_p0), %v2914_v6  ;;  %s2591_s30 = sshll.u32 (!%p359_p0), %s2896_s16, 1  ;;  %s2381_s23 = scalar_lea.sflag (!%p359_p0), [#allocation4], %s3066_s28 }
  0x2c   : > { %v410_v12 = vpack.c.bf16 (!%p359_p0), %v408_v10, %v406_v9  ;;  %v407_v13 = vld [vmem:[%s367_s11 + $0x10] sm:$0xff] (!%p359_p0)  ;;  %v662_v20 = vld [vmem:[%s3843_s4 + $0x8] sm:$0xff] (!%p359_p0)  ;;  %v661_v21 = vld [vmem:[%s3843_s4] sm:$0xff] (!%p359_p0)  ;;  %s3352_s29 = scalar_lea.vmem (!%p359_p0), [#allocation3], %s2631_s25  ;;  %s2632_s25 = smul.u32 (!%p359_p0), 48, %s2900_s17 }
  0x2d   : > { %v409_v14 = vpack.c.bf16 (!%p359_p0), %v407_v13, %v405_v11  ;;  %v2711_v22 = vld [vmem:[%s3840_s1 + $0x8] sm:$0xff] (!%p359_p0)   ;;  %v664_v23 = vld [vmem:[%s3843_s4 + $0x18] sm:$0xff] (!%p359_p0)  ;;  %v663_v24 = vld [vmem:[%s3843_s4 + $0x10] sm:$0xff] (!%p359_p0)  ;;  %s2396_s13 = sshll.u32 (!%p359_p0), %s3352_s29, 4  ;;  %s2915_s22 = smov (!%p359_p0), [#allocation3]   ;;  %s3774_s13 = int_to_ptr.vmem [resolvable:$true] %s2396_s13 }
  0x2e   : > { %444 = vperm.xlu1 (!%p359_p0), %2709, %v422_v7   ;;  %434 = vperm.xlu0 (!%p359_p0), %2708, %v420_v8   ;;  %v666_v25 = vld [vmem:[%s3843_s4 + $0x28] sm:$0xff] (!%p359_p0)  ;;  %v665_v26 = vld [vmem:[%s3843_s4 + $0x20] sm:$0xff] (!%p359_p0)  ;;  %v2712_v27 = vld [vmem:[%s3840_s1 + $0x10] sm:$0xff] (!%p359_p0)   ;;  %s2393_s11 = sadd.s32 (!%p359_p0), %s2632_s25, %s2591_s30  ;;  %s2818_s21 = scalar_lea.vmem (!%p359_p0), %s3774_s13, 1536 }
  0x2f   : > { %500 = vmatprep.subr.bf16.mxu0 (!%p359_p0), %v410_v12  ;;  %v668_v28 = vld [vmem:[%s3843_s4 + $0x38] sm:$0xff] (!%p359_p0)  ;;  %v667_v29 = vld [vmem:[%s3843_s4 + $0x30] sm:$0xff] (!%p359_p0)  ;;  %v670_v30 = vld [vmem:[%s3843_s4 + $0x48] sm:$0xff] (!%p359_p0)  ;;  %s2592_s16 = sshll.u32 (!%p359_p0), %s2393_s11, 6  ;;  %p2819_p1 = scmp.ne.s32.totalorder (!%p359_p0), %s3774_s13, %s2818_s21 }
  0x30   : > { %501 = vmatpush1.bf16.msra.mxu0 %v409_v14  ;;  %v669_v31 = vld [vmem:[%s3843_s4 + $0x40] sm:$0xff]  ;;  %v2713_v32 = vld [vmem:[%s3840_s1 + $0x18] sm:$0xff]   ;;  %v671_v34 = vld [vmem:[%s3843_s4 + $0x50] sm:$0xff]  ;;  %s3783_s24 = scalar_lea.hbm %s3849_s10, %s2592_s16  ;;  %s2822_s25 = sshll.u32 %s2915_s22, 4  ;;  %s2823_s25 = int_to_ptr.vmem [resolvable:$false] %s2822_s25 }
  0x31   : > { %v672_v33 = vld [vmem:[%s3843_s4 + $0x58] sm:$0xff]  ;;  %v674_v35 = vld [vmem:[%s3843_s4 + $0x68] sm:$0xff]  ;;  %v673_v36 = vld [vmem:[%s3843_s4 + $0x60] sm:$0xff]  ;;  %p2820_p2 = pnand %p2819_p1, %p3034_p8  ;;  %s2824_s30 = scalar_lea.vmem %s2823_s25, 3072 }
  0x32   : > { %454 = vperm.xlu1 %2709, %v424_v15   ;;  %449 = vperm.xlu0 %2708, %v423_v16   ;;  %v676_v37 = vld [vmem:[%s3843_s4 + $0x78] sm:$0xff]  ;;  %v675_v38 = vld [vmem:[%s3843_s4 + $0x70] sm:$0xff]  ;;  %v678_v39 = vld [vmem:[%s3843_s4 + $0x88] sm:$0xff]  ;;  %p2825_p4 = scmp.lt.s32.totalorder %s3774_s13, %s2823_s25  ;;  %p2826_p5 = scmp.lt.s32.totalorder %s2824_s30, %s2818_s21 }
  0x33   : > { %2495 = vmatmul.mubr.msk.bf16.vlgmr.msra.gmra.mrb[0].mxu0 %vm487_vm0, %v2710_v17  ;;  %v677_v40 = vld [vmem:[%s3843_s4 + $0x80] sm:$0xff]  ;;  %v680_v41 = vld [vmem:[%s3843_s4 + $0x98] sm:$0xff]  ;;  %v679_v42 = vld [vmem:[%s3843_s4 + $0x90] sm:$0xff]  ;;  %p2821_p3 = pneg %p2820_p2 }
  0x34   : > { %542 = vmatprep.mubr.bf16.mxu0 %v2914_v6  ;;  %v682_v43 = vld [vmem:[%s3843_s4 + $0xa8] sm:$0xff]  ;;  %v681_v44 = vld [vmem:[%s3843_s4 + $0xa0] sm:$0xff]  ;;  %v684_v45 = vld [vmem:[%s3843_s4 + $0xb8] sm:$0xff]  ;;  %p2827_p6 = por %p2826_p5, %p2825_p4 }
  0x35   : > { %v683_v46 = vld [vmem:[%s3843_s4 + $0xb0] sm:$0xff]  ;;  %v686_v47 = vld [vmem:[%s3843_s4 + $0xc8] sm:$0xff]  ;;  %v685_v48 = vld [vmem:[%s3843_s4 + $0xc0] sm:$0xff] }
  0x36   : > { %464 = vperm.xlu1 %2709, %v426_v18   ;;  %459 = vperm.xlu0 %2708, %v425_v19   ;;  %v688_v49 = vld [vmem:[%s3843_s4 + $0xd8] sm:$0xff]  ;;  %v687_v50 = vld [vmem:[%s3843_s4 + $0xd0] sm:$0xff]  ;;  %v690_v51 = vld [vmem:[%s3843_s4 + $0xe8] sm:$0xff]  ;;  %p2828_p7 = pnand %p2827_p6, %p2821_p3 }
  0x37   : > { %v689_v52 = vld [vmem:[%s3843_s4 + $0xe0] sm:$0xff]  ;;  %v692_v53 = vld [vmem:[%s3843_s4 + $0xf8] sm:$0xff]  ;;  %v691_v54 = vld [vmem:[%s3843_s4 + $0xf0] sm:$0xff] }
  0x38   : > { %v694_v55 = vld [vmem:[%s3843_s4 + $0x108] sm:$0xff]  ;;  %v693_v56 = vld [vmem:[%s3843_s4 + $0x100] sm:$0xff]  ;;  %v696_v57 = vld [vmem:[%s3843_s4 + $0x118] sm:$0xff] }
  0x39   : > { %v695_v58 = vld [vmem:[%s3843_s4 + $0x110] sm:$0xff]  ;;  %v698_v59 = vld [vmem:[%s3843_s4 + $0x128] sm:$0xff]  ;;  %v697_v60 = vld [vmem:[%s3843_s4 + $0x120] sm:$0xff] }
  0x3a   : > { %732 = vperm.xlu1 %2709, %v662_v20   ;;  %727 = vperm.xlu0 %2708, %v661_v21   ;;  %v700_v61 = vld [vmem:[%s3843_s4 + $0x138] sm:$0xff]  ;;  %v699_v62 = vld [vmem:[%s3843_s4 + $0x130] sm:$0xff]  ;;  %v702_v63 = vld [vmem:[%s3843_s4 + $0x148] sm:$0xff] }
  0x3b   : > { %2496 = vmatmul.mubr.msk.bf16.gmra.mrb[4].mxu0 %vm487_vm0, %v2711_v22  ;;  %v701_v0 = vld [vmem:[%s3843_s4 + $0x140] sm:$0xff]  ;;  %v704_v1 = vld [vmem:[%s3843_s4 + $0x158] sm:$0xff]  ;;  %v703_v2 = vld [vmem:[%s3843_s4 + $0x150] sm:$0xff] }
  0x3c   : > { %552 = vmatprep.mubr.bf16.mxu0 %v2914_v6  ;;  %v706_v3 = vld [vmem:[%s3843_s4 + $0x168] sm:$0xff]  ;;  %v705_v4 = vld [vmem:[%s3843_s4 + $0x160] sm:$0xff]  ;;  %v708_v5 = vld [vmem:[%s3843_s4 + $0x178] sm:$0xff] }
  0x3d   : > { %v707_v7 = vld [vmem:[%s3843_s4 + $0x170] sm:$0xff]  ;;  %v710_v8 = vld [vmem:[%s3843_s4 + $0x188] sm:$0xff]  ;;  %v709_v9 = vld [vmem:[%s3843_s4 + $0x180] sm:$0xff] }
  0x3e   : > { %742 = vperm.xlu1 %2709, %v664_v23   ;;  %737 = vperm.xlu0 %2708, %v663_v24   ;;  %v712_v10 = vld [vmem:[%s3843_s4 + $0x198] sm:$0xff]  ;;  %v711_v11 = vld [vmem:[%s3843_s4 + $0x190] sm:$0xff]  ;;  %v714_v12 = vld [vmem:[%s3843_s4 + $0x1a8] sm:$0xff] }
  0x3f   : > { %v713_v13 = vld [vmem:[%s3843_s4 + $0x1a0] sm:$0xff]  ;;  %v716_v14 = vld [vmem:[%s3843_s4 + $0x1b8] sm:$0xff]  ;;  %v715_v15 = vld [vmem:[%s3843_s4 + $0x1b0] sm:$0xff] }
  0x40   : > { %v718_v16 = vld [vmem:[%s3843_s4 + $0x1c8] sm:$0xff]  ;;  %v717_v17 = vld [vmem:[%s3843_s4 + $0x1c0] sm:$0xff]  ;;  %v720_v18 = vld [vmem:[%s3843_s4 + $0x1d8] sm:$0xff] }
  0x41   : > { %v719_v19 = vld [vmem:[%s3843_s4 + $0x1d0] sm:$0xff]  ;;  %v722_v20 = vld [vmem:[%s3843_s4 + $0x1e8] sm:$0xff]  ;;  %v721_v21 = vld [vmem:[%s3843_s4 + $0x1e0] sm:$0xff] }
  0x42   : > { %752 = vperm.xlu1 %2709, %v666_v25   ;;  %747 = vperm.xlu0 %2708, %v665_v26   ;;  %v724_v22 = vld [vmem:[%s3843_s4 + $0x1f8] sm:$0xff]  ;;  %v723_v23 = vld [vmem:[%s3843_s4 + $0x1f0] sm:$0xff]  ;;  %v1856_v25 = vld [vmem:[%s3845_s6 + $0x8] sm:$0xff] }
  0x43   : > { %2497 = vmatmul.mubr.msk.bf16.gmra.mrb[8].mxu0 %vm487_vm0, %v2712_v27  ;;  %v1857_v24 = vld [vmem:[%s3845_s6 + $0x10] sm:$0xff]  ;;  %v1858_v26 = vld [vmem:[%s3845_s6 + $0x18] sm:$0xff]  ;;  %v1855_v27 = vld [vmem:[%s3845_s6] sm:$0xff] }
  0x44   : > { %562 = vmatprep.mubr.bf16.mxu0 %v2914_v6 }
  0x46   : > { %762 = vperm.xlu1 %2709, %v668_v28   ;;  %757 = vperm.xlu0 %2708, %v667_v29   ;;  %v2083_v28 = vld [vmem:[%s3846_s7 + $0x10] sm:$0xff]  ;;  %v2082_v29 = vld [vmem:[%s3846_s7 + $0x8] sm:$0xff] }
  0x4a   : > { %772 = vperm.xlu1 %2709, %v670_v30   ;;  %767 = vperm.xlu0 %2708, %v669_v31   ;;  %v2115_v30 = vld [vmem:[%s3847_s8 + $0x10] sm:$0xff]  ;;  %v2114_v31 = vld [vmem:[%s3847_s8 + $0x8] sm:$0xff] }
  0x4b   : > { %2498 = vmatmul.mubr.msk.bf16.gmra.mrb[12].mxu0 %vm487_vm0, %v2713_v32  ;;  %v2084_v32 = vld [vmem:[%s3846_s7 + $0x18] sm:$0xff] }
  0x4c   : > { %1334 = vmatprep.mubr.bf16.mxu0 %v2914_v6 }
  0x4e   : > { %782 = vperm.xlu1 %2709, %v672_v33   ;;  %777 = vperm.xlu0 %2708, %v671_v34   ;;  %v2081_v33 = vld [vmem:[%s3846_s7] sm:$0xff]  ;;  %v2116_v34 = vld [vmem:[%s3847_s8 + $0x18] sm:$0xff] }
  0x52   : > { %792 = vperm.xlu1 %2709, %v674_v35   ;;  %787 = vperm.xlu0 %2708, %v673_v36   ;;  %v2113_v35 = vld [vmem:[%s3847_s8] sm:$0xff]  ;;  %v2155_v36 = vld [vmem:[%s3848_s9 + $0x10] sm:$0xff] }
  0x56   : > { %802 = vperm.xlu1 %2709, %v676_v37   ;;  %797 = vperm.xlu0 %2708, %v675_v38   ;;  %v2154_v37 = vld [vmem:[%s3848_s9 + $0x8] sm:$0xff]  ;;  %v2156_v38 = vld [vmem:[%s3848_s9 + $0x18] sm:$0xff] }
  0x5a   : > { %812 = vperm.xlu1 %2709, %v678_v39   ;;  %807 = vperm.xlu0 %2708, %v677_v40   ;;  %v2153_v39 = vld [vmem:[%s3848_s9] sm:$0xff] }
  0x5e   : > { %822 = vperm.xlu1 %2709, %v680_v41   ;;  %817 = vperm.xlu0 %2708, %v679_v42  }
  0x62   : > { %832 = vperm.xlu1 %2709, %v682_v43   ;;  %827 = vperm.xlu0 %2708, %v681_v44  }
  0x66   : > { %842 = vperm.xlu1 %2709, %v684_v45   ;;  %837 = vperm.xlu0 %2708, %v683_v46  }
  0x6a   : > { %852 = vperm.xlu1 %2709, %v686_v47   ;;  %847 = vperm.xlu0 %2708, %v685_v48  }
  0x6e   : > { %862 = vperm.xlu1 %2709, %v688_v49   ;;  %857 = vperm.xlu0 %2708, %v687_v50  }
  0x72   : > { %872 = vperm.xlu1 %2709, %v690_v51   ;;  %867 = vperm.xlu0 %2708, %v689_v52  }
  0x76   : > { %882 = vperm.xlu1 %2709, %v692_v53   ;;  %877 = vperm.xlu0 %2708, %v691_v54  }
  0x7a   : > { %892 = vperm.xlu1 %2709, %v694_v55   ;;  %887 = vperm.xlu0 %2708, %v693_v56  }
  0x7e   : > { %902 = vperm.xlu1 %2709, %v696_v57   ;;  %897 = vperm.xlu0 %2708, %v695_v58  }
  0x82   : > { %912 = vperm.xlu1 %2709, %v698_v59   ;;  %907 = vperm.xlu0 %2708, %v697_v60  }
  0x86   : > { %922 = vperm.xlu1 %2709, %v700_v61   ;;  %917 = vperm.xlu0 %2708, %v699_v62  }
  0x8a   : > { %932 = vperm.xlu1 %2709, %v702_v63   ;;  %927 = vperm.xlu0 %2708, %v701_v0  }
  0x8e   : > { %942 = vperm.xlu1 %2709, %v704_v1   ;;  %937 = vperm.xlu0 %2708, %v703_v2  }
  0x92   : > { %952 = vperm.xlu1 %2709, %v706_v3   ;;  %947 = vperm.xlu0 %2708, %v705_v4  }
  0x96   : > { %962 = vperm.xlu1 %2709, %v708_v5   ;;  %957 = vperm.xlu0 %2708, %v707_v7  }
  0x9a   : > { %972 = vperm.xlu1 %2709, %v710_v8   ;;  %967 = vperm.xlu0 %2708, %v709_v9  }
  0x9e   : > { %982 = vperm.xlu1 %2709, %v712_v10   ;;  %977 = vperm.xlu0 %2708, %v711_v11  }
  0xa2   : > { %992 = vperm.xlu1 %2709, %v714_v12   ;;  %987 = vperm.xlu0 %2708, %v713_v13  }
  0xa6   : > { %1002 = vperm.xlu1 %2709, %v716_v14   ;;  %997 = vperm.xlu0 %2708, %v715_v15  }
  0xa9   : > { %v430_v40 = vpop.permute.xlu0 %429  ;;  %v440_v50 = vpop.permute.xlu1 %439 }
  0xaa   : > { %1012 = vperm.xlu1 %2709, %v718_v16   ;;  %1007 = vperm.xlu0 %2708, %v717_v17  }
  0xad   : > { %v435_v44 = vpop.permute.xlu0 %434  ;;  %v445_v62 = vpop.permute.xlu1 %444 }
  0xae   : > { %1022 = vperm.xlu1 %2709, %v720_v18   ;;  %1017 = vperm.xlu0 %2708, %v719_v19  }
  0xb1   : > { %v450_v11 = vpop.permute.xlu0 %449  ;;  %v455_v17 = vpop.permute.xlu1 %454 }
  0xb2   : > { %1032 = vperm.xlu1 %2709, %v722_v20   ;;  %1027 = vperm.xlu0 %2708, %v721_v21  }
  0xb6   : > { %1042 = vperm.xlu1 %2709, %v724_v22   ;;  %1037 = vperm.xlu0 %2708, %v723_v23  }
  0xba   : > { %1871 = vperm.xlu1 %2709, %v1857_v24   ;;  %1866 = vperm.xlu0 %2708, %v1856_v25  }
  0xbe   : > { %1876 = vperm.xlu1 %2709, %v1858_v26   ;;  %1861 = vperm.xlu0 %2708, %v1855_v27  }
  0xc2   : > { %2097 = vperm.xlu1 %2709, %v2083_v28   ;;  %2092 = vperm.xlu0 %2708, %v2082_v29   ;;  %v460_v29 = vpop.permute.xlu0 %459 }
  0xc6   : > { %2129 = vperm.xlu1 %2709, %v2115_v30   ;;  %2124 = vperm.xlu0 %2708, %v2114_v31  }
  0xca   : > { %2102 = vperm.xlu1 %2709, %v2084_v32   ;;  %2087 = vperm.xlu0 %2708, %v2081_v33  }
  0xce   : > { %2134 = vperm.xlu1 %2709, %v2116_v34   ;;  %2119 = vperm.xlu0 %2708, %v2113_v35   ;;  %v465_v35 = vpop.permute.xlu1 %464 }
  0xd2   : > { %2169 = vperm.xlu1 %2709, %v2155_v36   ;;  %2164 = vperm.xlu0 %2708, %v2154_v37  }
  0xd6   : > { %2174 = vperm.xlu1 %2709, %v2156_v38   ;;  %2159 = vperm.xlu0 %2708, %v2153_v39  }
 0x106   : > { %v534_v41 = vpop.f32.mrb[0].mxu0 }
 0x107   : > { %v535_v42 = vadd.f32 %v534_v41, %v430_v40  ;;  %v536_v43 = vpop.f32.mrb[1].mxu0 }
 0x108   : > { %v537_v45 = vadd.f32 %v536_v43, %v430_v40  ;;  %v538_v46 = vpop.f32.mrb[2].mxu0 }
 0x109   : > { %v573_v47 = vmax.f32 %v535_v42, 0.0  ;;  %v539_v48 = vadd.f32 %v538_v46, %v435_v44  ;;  %v540_v49 = vpop.f32.mrb[3].mxu0 }
 0x10a   : > { %v574_v51 = vmax.f32 %v537_v45, 0.0  ;;  %v541_v52 = vadd.f32 %v540_v49, %v435_v44  ;;  %v2714_v49 = vld [vmem:[%s3842_s3] sm:$0xff]  }
 0x10b   : > { %v575_v53 = vmax.f32 %v539_v48, 0.0 }
 0x10c   : > { %v2595_v54 = vpack.c.bf16 %v574_v51, %v573_v47  ;;  %v576_v55 = vmax.f32 %v541_v52, 0.0  ;;  %v2717_v52 = vld [vmem:[%s3842_s3 + $0x50] sm:$0xff]  }
 0x10d   : > { %v589_v56 = vpack.c.bf16 %v575_v53, %v573_v47 }
 0x10e   : > { %2344 = vst [vmem:[%s3352_s29] sm:$0xff] %v2595_v54  ;;  %v590_v57 = vpack.c.bf16 %v576_v55, %v574_v51  ;;  %v2596_v58 = vpack.c.bf16 %v576_v55, %v575_v53  ;;  %v544_v59 = vpop.f32.mrb[4].mxu0  ;;  %v2716_v51 = vld [vmem:[%s3842_s3 + $0x8] sm:$0xff]   ;;  %v2718_v53 = vld [vmem:[%s3842_s3 + $0x10] sm:$0xff]   ;;  %v2719_v54 = vld [vmem:[%s3842_s3 + $0x58] sm:$0xff]  }
 0x10f   : > { %v545_v60 = vadd.f32 %v544_v59, %v440_v50  ;;  %v546_v61 = vpop.f32.mrb[5].mxu0  ;;  %v2720_v55 = vld [vmem:[%s3842_s3 + $0x18] sm:$0xff]   ;;  %v2724_v59 = vld [vmem:[%s3842_s3 + $0x28] sm:$0xff]  }
 0x110   : > { %2345 = vst [vmem:[%s3352_s29 + $0x8] sm:$0xff] %v2596_v58  ;;  %v547_v63 = vadd.f32 %v546_v61, %v440_v50  ;;  %v548_v0 = vpop.f32.mrb[6].mxu0  ;;  %1302 = vmatprep.subr.bf16.mxu0 %v590_v57  ;;  %2607 = vmatprep.subr.bf16.mxu1 %v590_v57  ;;  %v2715_v50 = vld [vmem:[%s3842_s3 + $0x48] sm:$0xff]   ;;  %v2722_v57 = vld [vmem:[%s3842_s3 + $0x20] sm:$0xff]   ;;  %v2726_v61 = vld [vmem:[%s3842_s3 + $0x30] sm:$0xff]  }
 0x111   : > { %v577_v1 = vmax.f32 %v545_v60, 0.0  ;;  %v549_v2 = vadd.f32 %v548_v0, %v445_v62  ;;  %v550_v3 = vpop.f32.mrb[7].mxu0  ;;  %1303 = vmatpush1.bf16.msra.mxu0 %v589_v56  ;;  %2611 = vmatpush1.bf16.msra.mxu1 %v589_v56  ;;  %v2721_v56 = vld [vmem:[%s3842_s3 + $0x60] sm:$0xff]   ;;  %v2723_v58 = vld [vmem:[%s3842_s3 + $0x68] sm:$0xff]   ;;  %v2725_v60 = vld [vmem:[%s3842_s3 + $0x70] sm:$0xff]  }
 0x112   : > { %v578_v4 = vmax.f32 %v547_v63, 0.0  ;;  %v551_v5 = vadd.f32 %v550_v3, %v445_v62  ;;  %v2727_v62 = vld [vmem:[%s3842_s3 + $0x78] sm:$0xff]   ;;  %v2729_v0 = vld [vmem:[%s3842_s3 + $0x80] sm:$0xff]   ;;  %v2732_v3 = vld [vmem:[%s3842_s3 + $0x90] sm:$0xff]  }
 0x113   : > { %v579_v7 = vmax.f32 %v549_v2, 0.0  ;;  %v2728_v63 = vld [vmem:[%s3842_s3 + $0x38] sm:$0xff]   ;;  %v2731_v2 = vld [vmem:[%s3842_s3 + $0x88] sm:$0xff]  }
 0x114   : > { %v2597_v8 = vpack.c.bf16 %v578_v4, %v577_v1  ;;  %v580_v9 = vmax.f32 %v551_v5, 0.0  ;;  %v2734_v5 = vld [vmem:[%s3842_s3 + $0xa0] sm:$0xff]  }
 0x115   : > { %v591_v10 = vpack.c.bf16 %v579_v7, %v577_v1  ;;  %v2730_v1 = vld [vmem:[%s3842_s3 + $0x40] sm:$0xff]  }
 0x116   : > { %2346 = vst [vmem:[%s3352_s29 + $0x10] sm:$0xff] %v2597_v8  ;;  %v592_v12 = vpack.c.bf16 %v580_v9, %v578_v4  ;;  %v2598_v13 = vpack.c.bf16 %v580_v9, %v579_v7  ;;  %v554_v14 = vpop.f32.mrb[8].mxu0  ;;  %v2733_v4 = vld [vmem:[%s3842_s3 + $0x98] sm:$0xff]   ;;  %v2735_v7 = vld [vmem:[%s3842_s3 + $0xa8] sm:$0xff]   ;;  %v2736_v8 = vld [vmem:[%s3842_s3 + $0xb0] sm:$0xff]  }
 0x117   : > { %v555_v15 = vadd.f32 %v554_v14, %v450_v11  ;;  %v556_v16 = vpop.f32.mrb[9].mxu0  ;;  %v2737_v9 = vld [vmem:[%s3842_s3 + $0xb8] sm:$0xff]   ;;  %v2742_v14 = vld [vmem:[%s3842_s3 + $0xe0] sm:$0xff]  }
 0x118   : > { %2347 = vst [vmem:[%s3352_s29 + $0x18] sm:$0xff] %v2598_v13  ;;  %v557_v18 = vadd.f32 %v556_v16, %v450_v11  ;;  %v558_v19 = vpop.f32.mrb[10].mxu0  ;;  %1304 = vmatprep.subr.bf16.mxu0 %v592_v12  ;;  %2608 = vmatprep.subr.bf16.mxu1 %v592_v12  ;;  %v2739_v11 = vld [vmem:[%s3842_s3 + $0xc8] sm:$0xff]   ;;  %v2740_v12 = vld [vmem:[%s3842_s3 + $0xd0] sm:$0xff]   ;;  %v2741_v13 = vld [vmem:[%s3842_s3 + $0xd8] sm:$0xff]   ;;  %v728_v16 = vpop.permute.xlu0 %727 }
 0x119   : > { %v581_v20 = vmax.f32 %v555_v15, 0.0  ;;  %v559_v21 = vadd.f32 %v558_v19, %v455_v17  ;;  %v560_v22 = vpop.f32.mrb[11].mxu0  ;;  %1305 = vmatpush1.bf16.msra.mxu0 %v591_v10  ;;  %2612 = vmatpush1.bf16.msra.mxu1 %v591_v10  ;;  %v2738_v10 = vld [vmem:[%s3842_s3 + $0xc0] sm:$0xff]   ;;  %v733_v15 = vpop.permute.xlu1 %732 }
 0x11a   : > { %v582_v23 = vmax.f32 %v557_v18, 0.0  ;;  %v561_v24 = vadd.f32 %v560_v22, %v455_v17  ;;  %v2743_v17 = vld [vmem:[%s3842_s3 + $0xe8] sm:$0xff]  }
 0x11b   : > { %v583_v25 = vmax.f32 %v559_v21, 0.0 }
 0x11c   : > { %v2599_v26 = vpack.c.bf16 %v582_v23, %v581_v20  ;;  %v584_v27 = vmax.f32 %v561_v24, 0.0  ;;  %v738_v19 = vpop.permute.xlu0 %737 }
 0x11d   : > { %v593_v28 = vpack.c.bf16 %v583_v25, %v581_v20  ;;  %v3511_v18 = vpop.permute.xlu1 %742  ;;  %v2744_v20 = vld [vmem:[%s3842_s3 + $0xf0] sm:$0xff]  }
 0x11e   : > { %2348 = vst [vmem:[%s3352_s29 + $0x20] sm:$0xff] %v2599_v26  ;;  %v594_v30 = vpack.c.bf16 %v584_v27, %v582_v23  ;;  %v2600_v31 = vpack.c.bf16 %v584_v27, %v583_v25  ;;  %v564_v32 = vpop.f32.mrb[12].mxu0  ;;  %v2745_v23 = vld [vmem:[%s3842_s3 + $0xf8] sm:$0xff]  }
 0x11f   : > { %v565_v33 = vadd.f32 %v564_v32, %v460_v29  ;;  %v566_v34 = vpop.f32.mrb[13].mxu0 }
 0x120   : > { %2349 = vst [vmem:[%s3352_s29 + $0x28] sm:$0xff] %v2600_v31  ;;  %v567_v36 = vadd.f32 %v566_v34, %v460_v29  ;;  %v568_v37 = vpop.f32.mrb[14].mxu0  ;;  %1306 = vmatprep.subr.bf16.mxu0 %v594_v30  ;;  %2609 = vmatprep.subr.bf16.mxu1 %v594_v30  ;;  %v3518_v22 = vpop.permute.xlu0 %747 }
 0x121   : > { %v585_v38 = vmax.f32 %v565_v33, 0.0  ;;  %v569_v39 = vadd.f32 %v568_v37, %v465_v35  ;;  %v570_v40 = vpop.f32.mrb[15].mxu0  ;;  %1307 = vmatpush1.bf16.msra.mxu0 %v593_v28  ;;  %2613 = vmatpush1.bf16.msra.mxu1 %v593_v28  ;;  %v3516_v21 = vpop.permute.xlu1 %752 }
 0x122   : > { %v586_v41 = vmax.f32 %v567_v36, 0.0  ;;  %v571_v42 = vadd.f32 %v570_v40, %v465_v35 }
 0x123   : > { %v587_v43 = vmax.f32 %v569_v39, 0.0 }
 0x124   : > { %v2601_v44 = vpack.c.bf16 %v586_v41, %v585_v38  ;;  %v588_v45 = vmax.f32 %v571_v42, 0.0  ;;  %v3527_v25 = vpop.permute.xlu0 %757 }
 0x125   : > { %v595_v46 = vpack.c.bf16 %v587_v43, %v585_v38  ;;  %v3525_v24 = vpop.permute.xlu1 %762 }
 0x126   : > { %2350 = vst [vmem:[%s3352_s29 + $0x30] sm:$0xff] %v2601_v44  ;;  %v596_v47 = vpack.c.bf16 %v588_v45, %v586_v41  ;;  %v2602_v48 = vpack.c.bf16 %v588_v45, %v587_v43 }
 0x128   : > { %2351 = vst [vmem:[%s3352_s29 + $0x38] sm:$0xff] %v2602_v48  ;;  %1308 = vmatprep.subr.bf16.mxu0 %v596_v47  ;;  %2610 = vmatprep.subr.bf16.mxu1 %v596_v47  ;;  %v3532_v27 = vpop.permute.xlu0 %767 }
 0x129   : > { %1309 = vmatpush1.bf16.msra.mxu0 %v595_v46  ;;  %2614 = vmatpush1.bf16.msra.mxu1 %v595_v46  ;;  %v3530_v26 = vpop.permute.xlu1 %772 }
 0x12c   : > { %2531 = vmatmul.mubr.msk.bf16.vlgmr.msra.gmra.mrb[16].mxu0 %vm1205_vm1, %v2714_v49  ;;  %2540 = vmatmul.mubr.msk.bf16.vlgmr.msra.gmra.mrb[0].mxu1 %vm1205_vm1, %v2715_v50  ;;  %v3536_v29 = vpop.permute.xlu0 %777 }
 0x12d   : > { %1344 = vmatprep.mubr.bf16.mxu0 %v2914_v6  ;;  %1434 = vmatprep.mubr.bf16.mxu1 %v2914_v6  ;;  %v3534_v28 = vpop.permute.xlu1 %782 }
 0x130   : > { %v3543_v31 = vpop.permute.xlu0 %787 }
 0x131   : > { %v3541_v30 = vpop.permute.xlu1 %792 }
 0x134   : > { %2532 = vmatmul.mubr.msk.bf16.gmra.mrb[20].mxu0 %vm1205_vm1, %v2716_v51  ;;  %2541 = vmatmul.mubr.msk.bf16.gmra.mrb[4].mxu1 %vm1205_vm1, %v2717_v52  ;;  %v3547_v33 = vpop.permute.xlu0 %797 }
 0x135   : > { %1354 = vmatprep.mubr.bf16.mxu0 %v2914_v6  ;;  %1444 = vmatprep.mubr.bf16.mxu1 %v2914_v6  ;;  %v3545_v32 = vpop.permute.xlu1 %802 }
 0x138   : > { %v3551_v35 = vpop.permute.xlu0 %807 }
 0x139   : > { %v3549_v34 = vpop.permute.xlu1 %812 }
 0x13c   : > { %2533 = vmatmul.mubr.msk.bf16.gmra.mrb[24].mxu0 %vm1205_vm1, %v2718_v53  ;;  %2542 = vmatmul.mubr.msk.bf16.gmra.mrb[8].mxu1 %vm1205_vm1, %v2719_v54  ;;  %v818_v37 = vpop.permute.xlu0 %817 }
 0x13d   : > { %1364 = vmatprep.mubr.bf16.mxu0 %v2914_v6  ;;  %1454 = vmatprep.mubr.bf16.mxu1 %v2914_v6  ;;  %v823_v36 = vpop.permute.xlu1 %822 }
 0x144   : > { %2534 = vmatmul.mubr.msk.bf16.gmra.mrb[28].mxu0 %vm1205_vm1, %v2720_v55  ;;  %2543 = vmatmul.mubr.msk.bf16.gmra.mrb[12].mxu1 %vm1205_vm1, %v2721_v56 }
 0x145   : > { %1374 = vmatprep.mubr.bf16.mxu0 %v2914_v6  ;;  %1464 = vmatprep.mubr.bf16.mxu1 %v2914_v6 }
 0x14c   : > { %2535 = vmatmul.mubr.msk.bf16.gmra.mrb[32].mxu0 %vm1205_vm1, %v2722_v57  ;;  %2544 = vmatmul.mubr.msk.bf16.gmra.mrb[16].mxu1 %vm1205_vm1, %v2723_v58 }
 0x14d   : > { %1384 = vmatprep.mubr.bf16.mxu0 %v2914_v6  ;;  %1474 = vmatprep.mubr.bf16.mxu1 %v2914_v6 }
 0x154   : > { %2536 = vmatmul.mubr.msk.bf16.gmra.mrb[36].mxu0 %vm1205_vm1, %v2724_v59  ;;  %2545 = vmatmul.mubr.msk.bf16.gmra.mrb[20].mxu1 %vm1205_vm1, %v2725_v60 }
 0x155   : > { %1394 = vmatprep.mubr.bf16.mxu0 %v2914_v6  ;;  %1484 = vmatprep.mubr.bf16.mxu1 %v2914_v6 }
 0x15c   : > { %2537 = vmatmul.mubr.msk.bf16.gmra.mrb[40].mxu0 %vm1205_vm1, %v2726_v61  ;;  %2546 = vmatmul.mubr.msk.bf16.gmra.mrb[24].mxu1 %vm1205_vm1, %v2727_v62  ;;  %v833_v62 = vpop.permute.xlu1 %832 }
 0x15d   : > { %1404 = vmatprep.mubr.bf16.mxu0 %v2914_v6  ;;  %1494 = vmatprep.mubr.bf16.mxu1 %v2914_v6 }
 0x164   : > { %2538 = vmatmul.mubr.msk.bf16.gmra.mrb[44].mxu0 %vm1205_vm1, %v2728_v63  ;;  %2547 = vmatmul.mubr.msk.bf16.gmra.mrb[28].mxu1 %vm1205_vm1, %v2729_v0  ;;  %v828_v63 = vpop.permute.xlu0 %827 }
 0x165   : > { %1414 = vmatprep.mubr.bf16.mxu0 %v2914_v6  ;;  %1504 = vmatprep.mubr.bf16.mxu1 %v2914_v6 }
 0x16c   : > { %2539 = vmatmul.mubr.msk.bf16.gmra.mrb[48].mxu0 %vm1205_vm1, %v2730_v1  ;;  %2548 = vmatmul.mubr.msk.bf16.gmra.mrb[32].mxu1 %vm1205_vm1, %v2731_v2 }
 0x16d   : > { %1514 = vmatprep.mubr.bf16.mxu1 %v2914_v6 }
 0x174   : > { %2549 = vmatmul.mubr.msk.bf16.gmra.mrb[36].mxu1 %vm1205_vm1, %v2732_v3 }
 0x175   : > { %1524 = vmatprep.mubr.bf16.mxu1 %v2914_v6 }
 0x17c   : > { %2550 = vmatmul.mubr.msk.bf16.gmra.mrb[40].mxu1 %vm1205_vm1, %v2733_v4 }
 0x17d   : > { %1534 = vmatprep.mubr.bf16.mxu1 %v2914_v6 }
 0x184   : > { %2551 = vmatmul.mubr.msk.bf16.gmra.mrb[44].mxu1 %vm1205_vm1, %v2734_v5 }
 0x185   : > { %1544 = vmatprep.mubr.bf16.mxu1 %v2914_v6 }
 0x18c   : > { %2552 = vmatmul.mubr.msk.bf16.gmra.mrb[48].mxu1 %vm1205_vm1, %v2735_v7 }
 0x18d   : > { %1554 = vmatprep.mubr.bf16.mxu1 %v2914_v6 }
 0x194   : > { %2553 = vmatmul.mubr.msk.bf16.gmra.mrb[52].mxu1 %vm1205_vm1, %v2736_v8 }
 0x195   : > { %1564 = vmatprep.mubr.bf16.mxu1 %v2914_v6 }
 0x19c   : > { %2554 = vmatmul.mubr.msk.bf16.gmra.mrb[56].mxu1 %vm1205_vm1, %v2737_v9 }
 0x19d   : > { %1574 = vmatprep.mubr.bf16.mxu1 %v2914_v6 }
 0x1a4   : > { %2555 = vmatmul.mubr.msk.bf16.gmra.mrb[60].mxu1 %vm1205_vm1, %v2738_v10 }
 0x1a5   : > { %1584 = vmatprep.mubr.bf16.mxu1 %v2914_v6 }
 0x1ac   : > { %2556 = vmatmul.mubr.msk.bf16.gmra.mrb[64].mxu1 %vm1205_vm1, %v2739_v11 }
 0x1ad   : > { %1594 = vmatprep.mubr.bf16.mxu1 %v2914_v6 }
 0x1b4   : > { %2557 = vmatmul.mubr.msk.bf16.gmra.mrb[68].mxu1 %vm1205_vm1, %v2740_v12 }
 0x1b5   : > { %1604 = vmatprep.mubr.bf16.mxu1 %v2914_v6 }
 0x1bc   : > { %2558 = vmatmul.mubr.msk.bf16.gmra.mrb[72].mxu1 %vm1205_vm1, %v2741_v13 }
 0x1bd   : > { %1614 = vmatprep.mubr.bf16.mxu1 %v2914_v6 }
 0x1c4   : > { %2559 = vmatmul.mubr.msk.bf16.gmra.mrb[76].mxu1 %vm1205_vm1, %v2742_v14 }
 0x1c5   : > { %1624 = vmatprep.mubr.bf16.mxu1 %v2914_v6 }
 0x1cc   : > { %2560 = vmatmul.mubr.msk.bf16.gmra.mrb[80].mxu1 %vm1205_vm1, %v2743_v17 }
 0x1cd   : > { %1634 = vmatprep.mubr.bf16.mxu1 %v2914_v6 }
 0x1d4   : > { %2561 = vmatmul.mubr.msk.bf16.gmra.mrb[84].mxu1 %vm1205_vm1, %v2744_v20 }
 0x1d5   : > { %1644 = vmatprep.mubr.bf16.mxu1 %v2914_v6  ;;  %v2748_v6 = vld [vmem:[%s3844_s5 + $0x4] ss:$16 sps:$4 sm:$0xff]  }
 0x1d6   : > { %1951 = vmatprep.mubr.bf16.mxu0 %v2748_v6 }
 0x1dc   : > { %2562 = vmatmul.mubr.msk.bf16.gmra.mrb[88].mxu1 %vm1205_vm1, %v2745_v23 }
 0x1ff   : > { %v1336_v38 = vpop.f32.mrb[16].mxu0  ;;  %v1426_v39 = vpop.f32.mrb[0].mxu1 }
 0x200   : > { %v1337_v40 = vadd.f32 %v1336_v38, %v728_v16  ;;  %v1427_v41 = vadd.f32 %v1426_v39, %v818_v37  ;;  %v1338_v42 = vpop.f32.mrb[17].mxu0  ;;  %v1428_v43 = vpop.f32.mrb[1].mxu1 }
 0x201   : > { %v1339_v44 = vadd.f32 %v1338_v42, %v728_v16  ;;  %v1429_v45 = vadd.f32 %v1428_v43, %v818_v37  ;;  %v1340_v46 = vpop.f32.mrb[18].mxu0  ;;  %v1430_v47 = vpop.f32.mrb[2].mxu1 }
 0x202   : > { %v1341_v48 = vadd.f32 %v1340_v46, %v733_v15  ;;  %v1431_v49 = vadd.f32 %v1430_v47, %v823_v36  ;;  %v1342_v50 = vpop.f32.mrb[19].mxu0  ;;  %v1432_v51 = vpop.f32.mrb[3].mxu1  ;;  %v1655_v54 = vmax.f32 %v1337_v40, 0.0  ;;  %v1691_v55 = vmax.f32 %v1427_v41, 0.0 }
 0x203   : > { %v1343_v52 = vadd.f32 %v1342_v50, %v733_v15  ;;  %v1433_v53 = vadd.f32 %v1432_v51, %v823_v36  ;;  %v1656_v58 = vmax.f32 %v1339_v44, 0.0  ;;  %v1692_v59 = vmax.f32 %v1429_v45, 0.0  ;;  %v843_v43 = vpop.permute.xlu1 %842  ;;  %v838_v44 = vpop.permute.xlu0 %837 }
 0x204   : > { %v1657_v56 = vmax.f32 %v1341_v48, 0.0  ;;  %v1693_v57 = vmax.f32 %v1431_v49, 0.0 }
 0x205   : > { %v1658_v60 = vmax.f32 %v1343_v52, 0.0  ;;  %v1694_v61 = vmax.f32 %v1433_v53, 0.0 }
 0x206   : > { %v1783_v0 = vpack.c.bf16 %v1657_v56, %v1655_v54  ;;  %v3553_v1 = vpack.c.bf16 %v1693_v57, %v1691_v55 }
 0x207   : > { %v1784_v2 = vpack.c.bf16 %v1658_v60, %v1656_v58  ;;  %v3555_v3 = vpack.c.bf16 %v1694_v61, %v1692_v59  ;;  %v1346_v4 = vpop.f32.mrb[20].mxu0  ;;  %v1436_v5 = vpop.f32.mrb[4].mxu1 }
 0x208   : > { %v1347_v7 = vadd.f32 %v1346_v4, %v738_v19  ;;  %v1437_v8 = vadd.f32 %v1436_v5, %v828_v63  ;;  %v1348_v9 = vpop.f32.mrb[21].mxu0  ;;  %v1438_v10 = vpop.f32.mrb[5].mxu1 }
 0x209   : > { %v1349_v11 = vadd.f32 %v1348_v9, %v738_v19  ;;  %v1439_v12 = vadd.f32 %v1438_v10, %v828_v63  ;;  %v1350_v13 = vpop.f32.mrb[22].mxu0  ;;  %v1440_v14 = vpop.f32.mrb[6].mxu1  ;;  %1919 = vmatprep.subr.bf16.mxu0 %v1784_v2 }
 0x20a   : > { %v1351_v15 = vadd.f32 %v1350_v13, %v3511_v18  ;;  %v1441_v16 = vadd.f32 %v1440_v14, %v833_v62  ;;  %v1352_v17 = vpop.f32.mrb[23].mxu0  ;;  %v1442_v20 = vpop.f32.mrb[7].mxu1  ;;  %1920 = vmatpush1.bf16.msra.mxu0 %v1783_v0  ;;  %v1659_v36 = vmax.f32 %v1347_v7, 0.0  ;;  %v1695_v37 = vmax.f32 %v1437_v8, 0.0 }
 0x20b   : > { %v1353_v23 = vadd.f32 %v1352_v17, %v3511_v18  ;;  %v1443_v6 = vadd.f32 %v1442_v20, %v833_v62  ;;  %v1660_v40 = vmax.f32 %v1349_v11, 0.0  ;;  %v1696_v41 = vmax.f32 %v1439_v12, 0.0  ;;  %v853_v10 = vpop.permute.xlu1 %852  ;;  %v848_v11 = vpop.permute.xlu0 %847 }
 0x20c   : > { %v1661_v38 = vmax.f32 %v1351_v15, 0.0  ;;  %v1697_v39 = vmax.f32 %v1441_v16, 0.0 }
 0x20d   : > { %v1662_v19 = vmax.f32 %v1353_v23, 0.0  ;;  %v1698_v42 = vmax.f32 %v1443_v6, 0.0 }
 0x20e   : > { %v1785_v45 = vpack.c.bf16 %v1661_v38, %v1659_v36  ;;  %v3559_v46 = vpack.c.bf16 %v1697_v39, %v1695_v37 }
 0x20f   : > { %v1786_v47 = vpack.c.bf16 %v1662_v19, %v1660_v40  ;;  %v3561_v48 = vpack.c.bf16 %v1698_v42, %v1696_v41  ;;  %v1356_v49 = vpop.f32.mrb[24].mxu0  ;;  %v1446_v50 = vpop.f32.mrb[8].mxu1 }
 0x210   : > { %v1357_v18 = vadd.f32 %v1356_v49, %v3518_v22  ;;  %v1447_v51 = vadd.f32 %v1446_v50, %v838_v44  ;;  %v1358_v52 = vpop.f32.mrb[25].mxu0  ;;  %v1448_v53 = vpop.f32.mrb[9].mxu1 }
 0x211   : > { %v1359_v54 = vadd.f32 %v1358_v52, %v3518_v22  ;;  %v1449_v55 = vadd.f32 %v1448_v53, %v838_v44  ;;  %v1360_v56 = vpop.f32.mrb[26].mxu0  ;;  %v1450_v57 = vpop.f32.mrb[10].mxu1  ;;  %1921 = vmatprep.subr.bf16.mxu0 %v1786_v47 }
 0x212   : > { %v1361_v58 = vadd.f32 %v1360_v56, %v3516_v21  ;;  %v1451_v59 = vadd.f32 %v1450_v57, %v843_v43  ;;  %v1362_v60 = vpop.f32.mrb[27].mxu0  ;;  %v1452_v61 = vpop.f32.mrb[11].mxu1  ;;  %1922 = vmatpush1.bf16.msra.mxu0 %v1785_v45  ;;  %v1663_v0 = vmax.f32 %v1357_v18, 0.0  ;;  %v1699_v2 = vmax.f32 %v1447_v51, 0.0 }
 0x213   : > { %v1363_v62 = vadd.f32 %v1362_v60, %v3516_v21  ;;  %v1453_v63 = vadd.f32 %v1452_v61, %v843_v43  ;;  %v1664_v7 = vmax.f32 %v1359_v54, 0.0  ;;  %v1700_v8 = vmax.f32 %v1449_v55, 0.0  ;;  %v863_v53 = vpop.permute.xlu1 %862  ;;  %v858_v54 = vpop.permute.xlu0 %857 }
 0x214   : > { %v1665_v4 = vmax.f32 %v1361_v58, 0.0  ;;  %v1701_v5 = vmax.f32 %v1451_v59, 0.0 }
 0x215   : > { %v1666_v22 = vmax.f32 %v1363_v62, 0.0  ;;  %v1702_v9 = vmax.f32 %v1453_v63, 0.0 }
 0x216   : > { %v1787_v12 = vpack.c.bf16 %v1665_v4, %v1663_v0  ;;  %v3567_v13 = vpack.c.bf16 %v1701_v5, %v1699_v2 }
 0x217   : > { %v1788_v14 = vpack.c.bf16 %v1666_v22, %v1664_v7  ;;  %v3569_v15 = vpack.c.bf16 %v1702_v9, %v1700_v8  ;;  %v1366_v16 = vpop.f32.mrb[28].mxu0  ;;  %v1456_v17 = vpop.f32.mrb[12].mxu1 }
 0x218   : > { %v1367_v21 = vadd.f32 %v1366_v16, %v3527_v25  ;;  %v1457_v20 = vadd.f32 %v1456_v17, %v848_v11  ;;  %v1368_v23 = vpop.f32.mrb[29].mxu0  ;;  %v1458_v6 = vpop.f32.mrb[13].mxu1 }
 0x219   : > { %v1369_v36 = vadd.f32 %v1368_v23, %v3527_v25  ;;  %v1459_v37 = vadd.f32 %v1458_v6, %v848_v11  ;;  %v1370_v38 = vpop.f32.mrb[30].mxu0  ;;  %v1460_v39 = vpop.f32.mrb[14].mxu1  ;;  %1923 = vmatprep.subr.bf16.mxu0 %v1788_v14 }
 0x21a   : > { %v1371_v40 = vadd.f32 %v1370_v38, %v3525_v24  ;;  %v1461_v41 = vadd.f32 %v1460_v39, %v853_v10  ;;  %v1372_v19 = vpop.f32.mrb[31].mxu0  ;;  %v1462_v42 = vpop.f32.mrb[15].mxu1  ;;  %1924 = vmatpush1.bf16.msra.mxu0 %v1787_v12  ;;  %v1667_v45 = vmax.f32 %v1367_v21, 0.0  ;;  %v1703_v47 = vmax.f32 %v1457_v20, 0.0 }
 0x21b   : > { %v1373_v43 = vadd.f32 %v1372_v19, %v3525_v24  ;;  %v1463_v44 = vadd.f32 %v1462_v42, %v853_v10  ;;  %v1668_v18 = vmax.f32 %v1369_v36, 0.0  ;;  %v1704_v51 = vmax.f32 %v1459_v37, 0.0  ;;  %v873_v6 = vpop.permute.xlu1 %872  ;;  %v868_v36 = vpop.permute.xlu0 %867 }
 0x21c   : > { %v1669_v49 = vmax.f32 %v1371_v40, 0.0  ;;  %v1705_v50 = vmax.f32 %v1461_v41, 0.0 }
 0x21d   : > { %v1670_v25 = vmax.f32 %v1373_v43, 0.0  ;;  %v1706_v52 = vmax.f32 %v1463_v44, 0.0 }
 0x21e   : > { %v1789_v55 = vpack.c.bf16 %v1669_v49, %v1667_v45  ;;  %v3575_v56 = vpack.c.bf16 %v1705_v50, %v1703_v47 }
 0x21f   : > { %v1790_v57 = vpack.c.bf16 %v1670_v25, %v1668_v18  ;;  %v3577_v58 = vpack.c.bf16 %v1706_v52, %v1704_v51  ;;  %v1376_v59 = vpop.f32.mrb[32].mxu0  ;;  %v1466_v60 = vpop.f32.mrb[16].mxu1 }
 0x220   : > { %v1377_v24 = vadd.f32 %v1376_v59, %v3532_v27  ;;  %v1467_v61 = vadd.f32 %v1466_v60, %v858_v54  ;;  %v1378_v62 = vpop.f32.mrb[33].mxu0  ;;  %v1468_v63 = vpop.f32.mrb[17].mxu1 }
 0x221   : > { %v1379_v0 = vadd.f32 %v1378_v62, %v3532_v27  ;;  %v1469_v2 = vadd.f32 %v1468_v63, %v858_v54  ;;  %v1380_v4 = vpop.f32.mrb[34].mxu0  ;;  %v1470_v5 = vpop.f32.mrb[18].mxu1  ;;  %1925 = vmatprep.subr.bf16.mxu0 %v1790_v57 }
 0x222   : > { %v1381_v7 = vadd.f32 %v1380_v4, %v3530_v26  ;;  %v1471_v8 = vadd.f32 %v1470_v5, %v863_v53  ;;  %v1382_v22 = vpop.f32.mrb[35].mxu0  ;;  %v1472_v9 = vpop.f32.mrb[19].mxu1  ;;  %1926 = vmatpush1.bf16.msra.mxu0 %v1789_v55  ;;  %v1671_v12 = vmax.f32 %v1377_v24, 0.0  ;;  %v1707_v14 = vmax.f32 %v1467_v61, 0.0 }
 0x223   : > { %v1383_v10 = vadd.f32 %v1382_v22, %v3530_v26  ;;  %v1473_v11 = vadd.f32 %v1472_v9, %v863_v53  ;;  %v1672_v21 = vmax.f32 %v1379_v0, 0.0  ;;  %v1708_v20 = vmax.f32 %v1469_v2, 0.0  ;;  %v883_v63 = vpop.permute.xlu1 %882  ;;  %v878_v0 = vpop.permute.xlu0 %877 }
 0x224   : > { %v1673_v16 = vmax.f32 %v1381_v7, 0.0  ;;  %v1709_v17 = vmax.f32 %v1471_v8, 0.0 }
 0x225   : > { %v1674_v27 = vmax.f32 %v1383_v10, 0.0  ;;  %v1710_v23 = vmax.f32 %v1473_v11, 0.0 }
 0x226   : > { %v1791_v37 = vpack.c.bf16 %v1673_v16, %v1671_v12  ;;  %v3583_v38 = vpack.c.bf16 %v1709_v17, %v1707_v14 }
 0x227   : > { %v1792_v39 = vpack.c.bf16 %v1674_v27, %v1672_v21  ;;  %v3585_v40 = vpack.c.bf16 %v1710_v23, %v1708_v20  ;;  %v1386_v41 = vpop.f32.mrb[36].mxu0  ;;  %v1476_v19 = vpop.f32.mrb[20].mxu1 }
 0x228   : > { %v1387_v26 = vadd.f32 %v1386_v41, %v3536_v29  ;;  %v1477_v42 = vadd.f32 %v1476_v19, %v868_v36  ;;  %v1388_v43 = vpop.f32.mrb[37].mxu0  ;;  %v1478_v44 = vpop.f32.mrb[21].mxu1 }
 0x229   : > { %v1389_v45 = vadd.f32 %v1388_v43, %v3536_v29  ;;  %v1479_v47 = vadd.f32 %v1478_v44, %v868_v36  ;;  %v1390_v49 = vpop.f32.mrb[38].mxu0  ;;  %v1480_v50 = vpop.f32.mrb[22].mxu1  ;;  %1927 = vmatprep.subr.bf16.mxu0 %v1792_v39 }
 0x22a   : > { %v1391_v18 = vadd.f32 %v1390_v49, %v3534_v28  ;;  %v1481_v51 = vadd.f32 %v1480_v50, %v873_v6  ;;  %v1392_v25 = vpop.f32.mrb[39].mxu0  ;;  %v1482_v52 = vpop.f32.mrb[23].mxu1  ;;  %1928 = vmatpush1.bf16.msra.mxu0 %v1791_v37  ;;  %v1675_v55 = vmax.f32 %v1387_v26, 0.0  ;;  %v1711_v57 = vmax.f32 %v1477_v42, 0.0 }
 0x22b   : > { %v1393_v53 = vadd.f32 %v1392_v25, %v3534_v28  ;;  %v1483_v54 = vadd.f32 %v1482_v52, %v873_v6  ;;  %v1676_v24 = vmax.f32 %v1389_v45, 0.0  ;;  %v1712_v61 = vmax.f32 %v1479_v47, 0.0  ;;  %v893_v44 = vpop.permute.xlu1 %892  ;;  %v888_v45 = vpop.permute.xlu0 %887 }
 0x22c   : > { %v1677_v59 = vmax.f32 %v1391_v18, 0.0  ;;  %v1713_v60 = vmax.f32 %v1481_v51, 0.0 }
 0x22d   : > { %v1678_v29 = vmax.f32 %v1393_v53, 0.0  ;;  %v1714_v62 = vmax.f32 %v1483_v54, 0.0 }
 0x22e   : > { %v1793_v2 = vpack.c.bf16 %v1677_v59, %v1675_v55  ;;  %v3591_v4 = vpack.c.bf16 %v1713_v60, %v1711_v57 }
 0x22f   : > { %v1794_v5 = vpack.c.bf16 %v1678_v29, %v1676_v24  ;;  %v3593_v7 = vpack.c.bf16 %v1714_v62, %v1712_v61  ;;  %v1396_v8 = vpop.f32.mrb[40].mxu0  ;;  %v1486_v22 = vpop.f32.mrb[24].mxu1 }
 0x230   : > { %v1397_v28 = vadd.f32 %v1396_v8, %v3543_v31  ;;  %v1487_v9 = vadd.f32 %v1486_v22, %v878_v0  ;;  %v1398_v10 = vpop.f32.mrb[41].mxu0  ;;  %v1488_v11 = vpop.f32.mrb[25].mxu1 }
 0x231   : > { %v1399_v12 = vadd.f32 %v1398_v10, %v3543_v31  ;;  %v1489_v14 = vadd.f32 %v1488_v11, %v878_v0  ;;  %v1400_v16 = vpop.f32.mrb[42].mxu0  ;;  %v1490_v17 = vpop.f32.mrb[26].mxu1  ;;  %1929 = vmatprep.subr.bf16.mxu0 %v1794_v5 }
 0x232   : > { %v1401_v21 = vadd.f32 %v1400_v16, %v3541_v30  ;;  %v1491_v20 = vadd.f32 %v1490_v17, %v883_v63  ;;  %v1402_v27 = vpop.f32.mrb[43].mxu0  ;;  %v1492_v23 = vpop.f32.mrb[27].mxu1  ;;  %1930 = vmatpush1.bf16.msra.mxu0 %v1793_v2  ;;  %v1679_v37 = vmax.f32 %v1397_v28, 0.0  ;;  %v1715_v39 = vmax.f32 %v1487_v9, 0.0 }
 0x233   : > { %v1403_v6 = vadd.f32 %v1402_v27, %v3541_v30  ;;  %v1493_v36 = vadd.f32 %v1492_v23, %v883_v63  ;;  %v1680_v26 = vmax.f32 %v1399_v12, 0.0  ;;  %v1716_v42 = vmax.f32 %v1489_v14, 0.0  ;;  %v903_v11 = vpop.permute.xlu1 %902  ;;  %v898_v12 = vpop.permute.xlu0 %897 }
 0x234   : > { %v1681_v41 = vmax.f32 %v1401_v21, 0.0  ;;  %v1717_v19 = vmax.f32 %v1491_v20, 0.0 }
 0x235   : > { %v1682_v31 = vmax.f32 %v1403_v6, 0.0  ;;  %v1718_v43 = vmax.f32 %v1493_v36, 0.0 }
 0x236   : > { %v1795_v47 = vpack.c.bf16 %v1681_v41, %v1679_v37  ;;  %v3599_v49 = vpack.c.bf16 %v1717_v19, %v1715_v39 }
 0x237   : > { %v1796_v50 = vpack.c.bf16 %v1682_v31, %v1680_v26  ;;  %v3601_v18 = vpack.c.bf16 %v1718_v43, %v1716_v42  ;;  %v1406_v51 = vpop.f32.mrb[44].mxu0  ;;  %v1496_v25 = vpop.f32.mrb[28].mxu1 }
 0x238   : > { %v1407_v30 = vadd.f32 %v1406_v51, %v3547_v33  ;;  %v1497_v52 = vadd.f32 %v1496_v25, %v888_v45  ;;  %v1408_v53 = vpop.f32.mrb[45].mxu0  ;;  %v1498_v54 = vpop.f32.mrb[29].mxu1 }
 0x239   : > { %v1409_v55 = vadd.f32 %v1408_v53, %v3547_v33  ;;  %v1499_v57 = vadd.f32 %v1498_v54, %v888_v45  ;;  %v1410_v59 = vpop.f32.mrb[46].mxu0  ;;  %v1500_v60 = vpop.f32.mrb[30].mxu1  ;;  %1931 = vmatprep.subr.bf16.mxu0 %v1796_v50 }
 0x23a   : > { %v1411_v24 = vadd.f32 %v1410_v59, %v3545_v32  ;;  %v1501_v61 = vadd.f32 %v1500_v60, %v893_v44  ;;  %v1412_v29 = vpop.f32.mrb[47].mxu0  ;;  %v1502_v62 = vpop.f32.mrb[31].mxu1  ;;  %1932 = vmatpush1.bf16.msra.mxu0 %v1795_v47  ;;  %v1683_v2 = vmax.f32 %v1407_v30, 0.0  ;;  %v1719_v5 = vmax.f32 %v1497_v52, 0.0 }
 0x23b   : > { %v1413_v63 = vadd.f32 %v1412_v29, %v3545_v32  ;;  %v1503_v0 = vadd.f32 %v1502_v62, %v893_v44  ;;  %v1684_v28 = vmax.f32 %v1409_v55, 0.0  ;;  %v1720_v9 = vmax.f32 %v1499_v57, 0.0  ;;  %v908_v57 = vpop.permute.xlu0 %907 }
 0x23c   : > { %v1685_v8 = vmax.f32 %v1411_v24, 0.0  ;;  %v1721_v22 = vmax.f32 %v1501_v61, 0.0 }
 0x23d   : > { %v1686_v33 = vmax.f32 %v1413_v63, 0.0  ;;  %v1722_v10 = vmax.f32 %v1503_v0, 0.0 }
 0x23e   : > { %v1797_v14 = vpack.c.bf16 %v1685_v8, %v1683_v2  ;;  %v3607_v16 = vpack.c.bf16 %v1721_v22, %v1719_v5 }
 0x23f   : > { %v1798_v17 = vpack.c.bf16 %v1686_v33, %v1684_v28  ;;  %v3609_v21 = vpack.c.bf16 %v1722_v10, %v1720_v9  ;;  %v1416_v20 = vpop.f32.mrb[48].mxu0  ;;  %v1506_v27 = vpop.f32.mrb[32].mxu1 }
 0x240   : > { %v1417_v32 = vadd.f32 %v1416_v20, %v3551_v35  ;;  %v1507_v23 = vadd.f32 %v1506_v27, %v898_v12  ;;  %v1418_v6 = vpop.f32.mrb[49].mxu0  ;;  %v1508_v36 = vpop.f32.mrb[33].mxu1 }
 0x241   : > { %v1419_v37 = vadd.f32 %v1418_v6, %v3551_v35  ;;  %v1509_v39 = vadd.f32 %v1508_v36, %v898_v12  ;;  %v1420_v41 = vpop.f32.mrb[50].mxu0  ;;  %v1510_v19 = vpop.f32.mrb[34].mxu1  ;;  %1933 = vmatprep.subr.bf16.mxu0 %v1798_v17 }
 0x242   : > { %v1421_v26 = vadd.f32 %v1420_v41, %v3549_v34  ;;  %v1511_v42 = vadd.f32 %v1510_v19, %v903_v11  ;;  %v1422_v31 = vpop.f32.mrb[51].mxu0  ;;  %v1512_v43 = vpop.f32.mrb[35].mxu1  ;;  %1934 = vmatpush1.bf16.msra.mxu0 %v1797_v14  ;;  %v1687_v47 = vmax.f32 %v1417_v32, 0.0  ;;  %v1723_v50 = vmax.f32 %v1507_v23, 0.0 }
 0x243   : > { %v1423_v44 = vadd.f32 %v1422_v31, %v3549_v34  ;;  %v1513_v45 = vadd.f32 %v1512_v43, %v903_v11  ;;  %v1688_v30 = vmax.f32 %v1419_v37, 0.0  ;;  %v1724_v52 = vmax.f32 %v1509_v39, 0.0  ;;  %v913_v34 = vpop.permute.xlu1 %912  ;;  %v918_v10 = vpop.permute.xlu0 %917 }
 0x244   : > { %v1689_v51 = vmax.f32 %v1421_v26, 0.0  ;;  %v1725_v25 = vmax.f32 %v1511_v42, 0.0 }
 0x245   : > { %v1690_v35 = vmax.f32 %v1423_v44, 0.0  ;;  %v1726_v53 = vmax.f32 %v1513_v45, 0.0 }
 0x246   : > { %v1799_v54 = vpack.c.bf16 %v1689_v51, %v1687_v47  ;;  %v3615_v55 = vpack.c.bf16 %v1725_v25, %v1723_v50 }
 0x247   : > { %v1800_v59 = vpack.c.bf16 %v1690_v35, %v1688_v30  ;;  %v3617_v60 = vpack.c.bf16 %v1726_v53, %v1724_v52  ;;  %v1516_v24 = vpop.f32.mrb[36].mxu1  ;;  %v923_v20 = vpop.permute.xlu1 %922 }
 0x248   : > { %v1517_v61 = vadd.f32 %v1516_v24, %v908_v57  ;;  %v1518_v29 = vpop.f32.mrb[37].mxu1 }
 0x249   : > { %v1519_v62 = vadd.f32 %v1518_v29, %v908_v57  ;;  %v1520_v63 = vpop.f32.mrb[38].mxu1  ;;  %1935 = vmatprep.subr.bf16.mxu0 %v1800_v59 }
 0x24a   : > { %v1521_v0 = vadd.f32 %v1520_v63, %v913_v34  ;;  %v1522_v2 = vpop.f32.mrb[39].mxu1  ;;  %1936 = vmatpush1.bf16.msra.mxu0 %v1799_v54  ;;  %v1727_v8 = vmax.f32 %v1517_v61, 0.0 }
 0x24b   : > { %v1523_v5 = vadd.f32 %v1522_v2, %v913_v34  ;;  %1937 = vmatprep.subr.bf16.mxu0 %v3555_v3  ;;  %v1728_v28 = vmax.f32 %v1519_v62, 0.0 }
 0x24c   : > { %v1729_v22 = vmax.f32 %v1521_v0, 0.0  ;;  %v2749_v0 = vld [vmem:[%s3844_s5 + $0x24] ss:$16 sps:$4 sm:$0xff]  }
 0x24d   : > { %v1730_v9 = vmax.f32 %v1523_v5, 0.0 }
 0x24e   : > { %v3620_v33 = vpack.c.bf16 %v1729_v22, %v1727_v8  ;;  %1938 = vmatpush1.bf16.msra.mxu0 %v3553_v1 }
 0x24f   : > { %v3623_v11 = vpack.c.bf16 %v1730_v9, %v1728_v28  ;;  %v1526_v12 = vpop.f32.mrb[40].mxu1  ;;  %1939 = vmatprep.subr.bf16.mxu0 %v3561_v48  ;;  %v928_v48 = vpop.permute.xlu0 %927 }
 0x250   : > { %v1527_v14 = vadd.f32 %v1526_v12, %v918_v10  ;;  %v1528_v17 = vpop.f32.mrb[41].mxu1 }
 0x251   : > { %v1529_v27 = vadd.f32 %v1528_v17, %v918_v10  ;;  %v1530_v32 = vpop.f32.mrb[42].mxu1 }
 0x252   : > { %v1531_v3 = vadd.f32 %v1530_v32, %v923_v20  ;;  %v1532_v23 = vpop.f32.mrb[43].mxu1  ;;  %1940 = vmatpush1.bf16.msra.mxu0 %v3559_v46  ;;  %v1731_v36 = vmax.f32 %v1527_v14, 0.0  ;;  %v933_v46 = vpop.permute.xlu1 %932 }
 0x253   : > { %v1533_v6 = vadd.f32 %v1532_v23, %v923_v20  ;;  %1941 = vmatprep.subr.bf16.mxu0 %v3569_v15  ;;  %v1732_v37 = vmax.f32 %v1529_v27, 0.0 }
 0x254   : > { %v1733_v1 = vmax.f32 %v1531_v3, 0.0  ;;  %v2754_v3 = vld [vmem:[%s3844_s5 + $0xc] ss:$16 sps:$4 sm:$0xff]  }
 0x255   : > { %v1734_v39 = vmax.f32 %v1533_v6, 0.0 }
 0x256   : > { %v3628_v41 = vpack.c.bf16 %v1733_v1, %v1731_v36  ;;  %1942 = vmatpush1.bf16.msra.mxu0 %v3567_v13 }
 0x257   : > { %v3631_v19 = vpack.c.bf16 %v1734_v39, %v1732_v37  ;;  %v1536_v26 = vpop.f32.mrb[44].mxu1  ;;  %1943 = vmatprep.subr.bf16.mxu0 %v3577_v58  ;;  %v938_v58 = vpop.permute.xlu0 %937 }
 0x258   : > { %v1537_v42 = vadd.f32 %v1536_v26, %v928_v48  ;;  %v1538_v31 = vpop.f32.mrb[45].mxu1 }
 0x259   : > { %v1539_v43 = vadd.f32 %v1538_v31, %v928_v48  ;;  %v1540_v44 = vpop.f32.mrb[46].mxu1 }
 0x25a   : > { %v1541_v15 = vadd.f32 %v1540_v44, %v933_v46  ;;  %v1542_v45 = vpop.f32.mrb[47].mxu1  ;;  %1944 = vmatpush1.bf16.msra.mxu0 %v3575_v56  ;;  %v1735_v50 = vmax.f32 %v1537_v42, 0.0  ;;  %v943_v56 = vpop.permute.xlu1 %942 }
 0x25b   : > { %v1543_v47 = vadd.f32 %v1542_v45, %v933_v46  ;;  %1945 = vmatprep.subr.bf16.mxu0 %v3585_v40  ;;  %v1736_v51 = vmax.f32 %v1539_v43, 0.0 }
 0x25c   : > { %v1737_v13 = vmax.f32 %v1541_v15, 0.0 }
 0x25d   : > { %v1738_v25 = vmax.f32 %v1543_v47, 0.0 }
 0x25e   : > { %v3636_v30 = vpack.c.bf16 %v1737_v13, %v1735_v50  ;;  %1946 = vmatpush1.bf16.msra.mxu0 %v3583_v38  ;;  %v953_v22 = vpop.permute.xlu1 %952 }
 0x25f   : > { %v3639_v52 = vpack.c.bf16 %v1738_v25, %v1736_v51  ;;  %v1546_v35 = vpop.f32.mrb[48].mxu1  ;;  %1947 = vmatprep.subr.bf16.mxu0 %v3593_v7  ;;  %v2746_v7 = vld [vmem:[%s3844_s5] ss:$16 sps:$4 sm:$0xff]  }
 0x260   : > { %v1547_v53 = vadd.f32 %v1546_v35, %v938_v58  ;;  %v1548_v54 = vpop.f32.mrb[49].mxu1 }
 0x261   : > { %v1549_v57 = vadd.f32 %v1548_v54, %v938_v58  ;;  %v1550_v59 = vpop.f32.mrb[50].mxu1 }
 0x262   : > { %v1551_v40 = vadd.f32 %v1550_v59, %v943_v56  ;;  %v1552_v24 = vpop.f32.mrb[51].mxu1  ;;  %1948 = vmatpush1.bf16.msra.mxu0 %v3591_v4  ;;  %v1739_v29 = vmax.f32 %v1547_v53, 0.0  ;;  %v948_v4 = vpop.permute.xlu0 %947 }
 0x263   : > { %v1553_v61 = vadd.f32 %v1552_v24, %v943_v56  ;;  %1949 = vmatprep.subr.bf16.mxu0 %v3601_v18  ;;  %v1740_v34 = vmax.f32 %v1549_v57, 0.0  ;;  %v963_v1 = vpop.permute.xlu1 %962 }
 0x264   : > { %v1741_v38 = vmax.f32 %v1551_v40, 0.0 }
 0x265   : > { %v1742_v62 = vmax.f32 %v1553_v61, 0.0 }
 0x266   : > { %v3647_v63 = vpack.c.bf16 %v1741_v38, %v1739_v29  ;;  %1950 = vmatpush1.bf16.msra.mxu0 %v3599_v49 }
 0x267   : > { %v1826_v2 = vpack.c.bf16 %v1742_v62, %v1740_v34  ;;  %v1556_v5 = vpop.f32.mrb[52].mxu1  ;;  %1972 = vmatprep.subr.bf16.mxu0 %v3609_v21  ;;  %v2751_v21 = vld [vmem:[%s3844_s5 + $0x20] ss:$16 sps:$4 sm:$0xff]   ;;  %v973_v13 = vpop.permute.xlu1 %972 }
 0x268   : > { %v1557_v18 = vadd.f32 %v1556_v5, %v948_v4  ;;  %v1558_v8 = vpop.f32.mrb[53].mxu1 }
 0x269   : > { %v1559_v28 = vadd.f32 %v1558_v8, %v948_v4  ;;  %v1560_v9 = vpop.f32.mrb[54].mxu1  ;;  %1952 = vmatmul.mubr.bf16.vlgmr.msra.gmra.mrb[52].mxu0 %v2746_v7 }
 0x26a   : > { %v1561_v10 = vadd.f32 %v1560_v9, %v953_v22  ;;  %v1562_v12 = vpop.f32.mrb[55].mxu1  ;;  %1973 = vmatpush1.bf16.msra.mxu0 %v3607_v16  ;;  %1961 = vmatprep.mubr.bf16.mxu0 %v2749_v0  ;;  %v1743_v14 = vmax.f32 %v1557_v18, 0.0  ;;  %v958_v16 = vpop.permute.xlu0 %957 }
 0x26b   : > { %v1563_v49 = vadd.f32 %v1562_v12, %v953_v22  ;;  %1974 = vmatprep.subr.bf16.mxu0 %v3617_v60  ;;  %v1744_v20 = vmax.f32 %v1559_v28, 0.0  ;;  %v983_v61 = vpop.permute.xlu1 %982 }
 0x26c   : > { %v1745_v17 = vmax.f32 %v1561_v10, 0.0 }
 0x26d   : > { %v1746_v27 = vmax.f32 %v1563_v49, 0.0 }
 0x26e   : > { %v1827_v32 = vpack.c.bf16 %v1745_v17, %v1743_v14  ;;  %1975 = vmatpush1.bf16.msra.mxu0 %v3615_v55 }
 0x26f   : > { %v1828_v23 = vpack.c.bf16 %v1746_v27, %v1744_v20  ;;  %v1566_v6 = vpop.f32.mrb[56].mxu1  ;;  %1976 = vmatprep.subr.bf16.mxu0 %v3623_v11  ;;  %v968_v11 = vpop.permute.xlu0 %967 }
 0x270   : > { %v1567_v60 = vadd.f32 %v1566_v6, %v958_v16  ;;  %v1568_v36 = vpop.f32.mrb[57].mxu1  ;;  %v993_v9 = vpop.permute.xlu1 %992 }
 0x271   : > { %v1569_v37 = vadd.f32 %v1568_v36, %v958_v16  ;;  %v1570_v39 = vpop.f32.mrb[58].mxu1  ;;  %1962 = vmatmul.mubr.bf16.gmra.mrb[56].mxu0 %v2751_v21 }
 0x272   : > { %v1571_v48 = vadd.f32 %v1570_v39, %v963_v1  ;;  %v1572_v26 = vpop.f32.mrb[59].mxu1  ;;  %1977 = vmatpush1.bf16.msra.mxu0 %v3620_v33  ;;  %2004 = vmatprep.mubr.bf16.mxu0 %v2754_v3  ;;  %v1747_v42 = vmax.f32 %v1567_v60, 0.0 }
 0x273   : > { %v1573_v55 = vadd.f32 %v1572_v26, %v963_v1  ;;  %1978 = vmatprep.subr.bf16.mxu0 %v3631_v19  ;;  %v1748_v46 = vmax.f32 %v1569_v37, 0.0  ;;  %v978_v57 = vpop.permute.xlu0 %977 }
 0x274   : > { %v1749_v31 = vmax.f32 %v1571_v48, 0.0  ;;  %v1003_v1 = vpop.permute.xlu1 %1002 }
 0x275   : > { %v1750_v43 = vmax.f32 %v1573_v55, 0.0 }
 0x276   : > { %v1829_v44 = vpack.c.bf16 %v1749_v31, %v1747_v42  ;;  %1979 = vmatpush1.bf16.msra.mxu0 %v3628_v41 }
 0x277   : > { %v1830_v15 = vpack.c.bf16 %v1750_v43, %v1748_v46  ;;  %v1576_v45 = vpop.f32.mrb[60].mxu1  ;;  %1980 = vmatprep.subr.bf16.mxu0 %v3639_v52 }
 0x278   : > { %v1577_v47 = vadd.f32 %v1576_v45, %v968_v11  ;;  %v1578_v50 = vpop.f32.mrb[61].mxu1 }
 0x279   : > { %v1579_v33 = vadd.f32 %v1578_v50, %v968_v11  ;;  %v1580_v51 = vpop.f32.mrb[62].mxu1 }
 0x27a   : > { %v1581_v25 = vadd.f32 %v1580_v51, %v973_v13  ;;  %v1582_v58 = vpop.f32.mrb[63].mxu1  ;;  %1981 = vmatpush1.bf16.msra.mxu0 %v3636_v30  ;;  %v1751_v35 = vmax.f32 %v1577_v47, 0.0 }
 0x27b   : > { %v1583_v19 = vadd.f32 %v1582_v58, %v973_v13  ;;  %1982 = vmatprep.subr.bf16.mxu0 %v1826_v2  ;;  %v1752_v54 = vmax.f32 %v1579_v33, 0.0  ;;  %v1013_v13 = vpop.permute.xlu1 %1012 }
 0x27c   : > { %v1753_v53 = vmax.f32 %v1581_v25, 0.0 }
 0x27d   : > { %v1754_v41 = vmax.f32 %v1583_v19, 0.0 }
 0x27e   : > { %v1831_v56 = vpack.c.bf16 %v1753_v53, %v1751_v35  ;;  %1983 = vmatpush1.bf16.msra.mxu0 %v3647_v63  ;;  %v988_v63 = vpop.permute.xlu0 %987 }
 0x27f   : > { %v1832_v52 = vpack.c.bf16 %v1754_v41, %v1752_v54  ;;  %v1586_v59 = vpop.f32.mrb[64].mxu1  ;;  %1984 = vmatprep.subr.bf16.mxu0 %v1828_v23 }
 0x280   : > { %v1587_v40 = vadd.f32 %v1586_v59, %v978_v57  ;;  %v1588_v24 = vpop.f32.mrb[65].mxu1 }
 0x281   : > { %v1589_v29 = vadd.f32 %v1588_v24, %v978_v57  ;;  %v1590_v38 = vpop.f32.mrb[66].mxu1 }
 0x282   : > { %v1591_v34 = vadd.f32 %v1590_v38, %v983_v61  ;;  %v1592_v30 = vpop.f32.mrb[67].mxu1  ;;  %1985 = vmatpush1.bf16.msra.mxu0 %v1827_v32  ;;  %v1755_v7 = vmax.f32 %v1587_v40, 0.0  ;;  %v998_v16 = vpop.permute.xlu0 %997 }
 0x283   : > { %v1593_v62 = vadd.f32 %v1592_v30, %v983_v61  ;;  %1986 = vmatprep.subr.bf16.mxu0 %v1830_v15  ;;  %v1756_v4 = vmax.f32 %v1589_v29, 0.0  ;;  %v1023_v61 = vpop.permute.xlu1 %1022 }
 0x284   : > { %v1757_v0 = vmax.f32 %v1591_v34, 0.0 }
 0x285   : > { %v1758_v2 = vmax.f32 %v1593_v62, 0.0 }
 0x286   : > { %v1833_v5 = vpack.c.bf16 %v1757_v0, %v1755_v7  ;;  %1987 = vmatpush1.bf16.msra.mxu0 %v1829_v44  ;;  %v1008_v11 = vpop.permute.xlu0 %1007 }
 0x287   : > { %v1834_v18 = vpack.c.bf16 %v1758_v2, %v1756_v4  ;;  %v1596_v8 = vpop.f32.mrb[68].mxu1  ;;  %1988 = vmatprep.subr.bf16.mxu0 %v1832_v52 }
 0x288   : > { %v1597_v22 = vadd.f32 %v1596_v8, %v988_v63  ;;  %v1598_v28 = vpop.f32.mrb[69].mxu1 }
 0x289   : > { %v1599_v10 = vadd.f32 %v1598_v28, %v988_v63  ;;  %v1600_v12 = vpop.f32.mrb[70].mxu1 }
 0x28a   : > { %v1601_v49 = vadd.f32 %v1600_v12, %v993_v9  ;;  %v1602_v14 = vpop.f32.mrb[71].mxu1  ;;  %1989 = vmatpush1.bf16.msra.mxu0 %v1831_v56  ;;  %v1759_v20 = vmax.f32 %v1597_v22, 0.0  ;;  %v1018_v57 = vpop.permute.xlu0 %1017 }
 0x28b   : > { %v1603_v17 = vadd.f32 %v1602_v14, %v993_v9  ;;  %1990 = vmatprep.subr.bf16.mxu0 %v1834_v18  ;;  %v1760_v21 = vmax.f32 %v1599_v10, 0.0  ;;  %v1033_v9 = vpop.permute.xlu1 %1032 }
 0x28c   : > { %v1761_v27 = vmax.f32 %v1601_v49, 0.0 }
 0x28d   : > { %v1762_v32 = vmax.f32 %v1603_v17, 0.0 }
 0x28e   : > { %v1835_v3 = vpack.c.bf16 %v1761_v27, %v1759_v20  ;;  %1991 = vmatpush1.bf16.msra.mxu0 %v1833_v5  ;;  %v1028_v63 = vpop.permute.xlu0 %1027 }
 0x28f   : > { %v1836_v23 = vpack.c.bf16 %v1762_v32, %v1760_v21  ;;  %v1606_v6 = vpop.f32.mrb[72].mxu1 }
 0x290   : > { %v1607_v60 = vadd.f32 %v1606_v6, %v998_v16  ;;  %v1608_v36 = vpop.f32.mrb[73].mxu1 }
 0x291   : > { %v1609_v37 = vadd.f32 %v1608_v36, %v998_v16  ;;  %v1610_v39 = vpop.f32.mrb[74].mxu1  ;;  %1992 = vmatprep.subr.bf16.mxu0 %v1836_v23 }
 0x292   : > { %v1611_v48 = vadd.f32 %v1610_v39, %v1003_v1  ;;  %v1612_v26 = vpop.f32.mrb[75].mxu1  ;;  %1993 = vmatpush1.bf16.msra.mxu0 %v1835_v3  ;;  %v1763_v42 = vmax.f32 %v1607_v60, 0.0  ;;  %v1038_v16 = vpop.permute.xlu0 %1037 }
 0x293   : > { %v1613_v55 = vadd.f32 %v1612_v26, %v1003_v1  ;;  %v1764_v46 = vmax.f32 %v1609_v37, 0.0  ;;  %v1043_v1 = vpop.permute.xlu1 %1042 }
 0x294   : > { %v1765_v31 = vmax.f32 %v1611_v48, 0.0 }
 0x295   : > { %v1766_v43 = vmax.f32 %v1613_v55, 0.0 }
 0x296   : > { %v1837_v44 = vpack.c.bf16 %v1765_v31, %v1763_v42 }
 0x297   : > { %v1838_v15 = vpack.c.bf16 %v1766_v43, %v1764_v46  ;;  %v1616_v45 = vpop.f32.mrb[76].mxu1 }
 0x298   : > { %v1617_v47 = vadd.f32 %v1616_v45, %v1008_v11  ;;  %v1618_v50 = vpop.f32.mrb[77].mxu1  ;;  %v2755_v45 = vld [vmem:[%s3844_s5 + $0x2c] ss:$16 sps:$4 sm:$0xff]  }
 0x299   : > { %v1619_v33 = vadd.f32 %v1618_v50, %v1008_v11  ;;  %v1620_v51 = vpop.f32.mrb[78].mxu1  ;;  %1994 = vmatprep.subr.bf16.mxu0 %v1838_v15  ;;  %v2752_v15 = vld [vmem:[%s3844_s5 + $0x8] ss:$16 sps:$4 sm:$0xff]   ;;  %v1867_v50 = vpop.permute.xlu0 %1866 }
 0x29a   : > { %v1621_v25 = vadd.f32 %v1620_v51, %v1013_v13  ;;  %v1622_v58 = vpop.f32.mrb[79].mxu1  ;;  %1995 = vmatpush1.bf16.msra.mxu0 %v1837_v44  ;;  %v1767_v35 = vmax.f32 %v1617_v47, 0.0  ;;  %v2757_v47 = vld [vmem:[%s3844_s5 + $0x28] ss:$16 sps:$4 sm:$0xff]  }
 0x29b   : > { %v1623_v19 = vadd.f32 %v1622_v58, %v1013_v13  ;;  %v1768_v54 = vmax.f32 %v1619_v33, 0.0  ;;  %v2185_v33 = vlaneseq }
 0x29c   : > { %v1769_v53 = vmax.f32 %v1621_v25, 0.0 }
 0x29d   : > { %v1770_v41 = vmax.f32 %v1623_v19, 0.0  ;;  %v1862_v13 = vpop.permute.xlu0 %1861  ;;  %v2186_v25 = vshrl.u32 %v2185_v33, 7 }
 0x29e   : > { %v1839_v56 = vpack.c.bf16 %v1769_v53, %v1767_v35 }
 0x29f   : > { %v1840_v52 = vpack.c.bf16 %v1770_v41, %v1768_v54  ;;  %v1626_v59 = vpop.f32.mrb[80].mxu1 }
 0x2a0   : > { %v1627_v40 = vadd.f32 %v1626_v59, %v1018_v57  ;;  %v1628_v24 = vpop.f32.mrb[81].mxu1  ;;  %v3681_v59 = vadd.s32 8, %v2186_v25 }
 0x2a1   : > { %v1629_v29 = vadd.f32 %v1628_v24, %v1018_v57  ;;  %v1630_v38 = vpop.f32.mrb[82].mxu1  ;;  %1996 = vmatprep.subr.bf16.mxu0 %v1840_v52  ;;  %v3679_v35 = vpop.permute.xlu0 %2092 }
 0x2a2   : > { %v1631_v34 = vadd.f32 %v1630_v38, %v1023_v61  ;;  %v1632_v30 = vpop.f32.mrb[83].mxu1  ;;  %1997 = vmatpush1.bf16.msra.mxu0 %v1839_v56  ;;  %v1771_v7 = vmax.f32 %v1627_v40, 0.0  ;;  %v1872_v57 = vpop.permute.xlu1 %1871  ;;  %v3683_v40 = vadd.s32 16, %v2186_v25  ;;  %vm2191_vm2 = vcmp.ge.s32.totalorder %v3681_v59, 9 }
 0x2a3   : > { %v1633_v62 = vadd.f32 %v1632_v30, %v1023_v61  ;;  %v1772_v4 = vmax.f32 %v1629_v29, 0.0 }
 0x2a4   : > { %v1773_v0 = vmax.f32 %v1631_v34, 0.0  ;;  %vm2196_vm3 = vcmp.lt.s32.totalorder %v3683_v40, 21 }
 0x2a5   : > { %v1774_v2 = vmax.f32 %v1633_v62, 0.0  ;;  %v3687_v61 = vpop.permute.xlu0 %2124 }
 0x2a6   : > { %v1841_v5 = vpack.c.bf16 %v1773_v0, %v1771_v7  ;;  %v1877_v62 = vpop.permute.xlu1 %1876 }
 0x2a7   : > { %v1842_v18 = vpack.c.bf16 %v1774_v2, %v1772_v4  ;;  %v1636_v8 = vpop.f32.mrb[84].mxu1 }
 0x2a8   : > { %v1637_v22 = vadd.f32 %v1636_v8, %v1028_v63  ;;  %v1638_v28 = vpop.f32.mrb[85].mxu1 }
 0x2a9   : > { %v1639_v10 = vadd.f32 %v1638_v28, %v1028_v63  ;;  %v1640_v12 = vpop.f32.mrb[86].mxu1  ;;  %1998 = vmatprep.subr.bf16.mxu0 %v1842_v18 }
 0x2aa   : > { %v1641_v49 = vadd.f32 %v1640_v12, %v1033_v9  ;;  %v1642_v14 = vpop.f32.mrb[87].mxu1  ;;  %1999 = vmatpush1.bf16.msra.mxu0 %v1841_v5  ;;  %v1775_v20 = vmax.f32 %v1637_v22, 0.0  ;;  %v2088_v12 = vpop.permute.xlu0 %2087 }
 0x2ab   : > { %v1643_v17 = vadd.f32 %v1642_v14, %v1033_v9  ;;  %v1776_v21 = vmax.f32 %v1639_v10, 0.0 }
 0x2ac   : > { %v1777_v27 = vmax.f32 %v1641_v49, 0.0 }
 0x2ad   : > { %v1778_v32 = vmax.f32 %v1643_v17, 0.0 }
 0x2ae   : > { %v1843_v3 = vpack.c.bf16 %v1777_v27, %v1775_v20 }
 0x2af   : > { %v1844_v23 = vpack.c.bf16 %v1778_v32, %v1776_v21  ;;  %v1646_v6 = vpop.f32.mrb[88].mxu1  ;;  %v3709_v21 = vpop.permute.xlu1 %2097 }
 0x2b0   : > { %v1647_v60 = vadd.f32 %v1646_v6, %v1038_v16  ;;  %v1648_v36 = vpop.f32.mrb[89].mxu1 }
 0x2b1   : > { %v1649_v37 = vadd.f32 %v1648_v36, %v1038_v16  ;;  %v1650_v39 = vpop.f32.mrb[90].mxu1  ;;  %2000 = vmatprep.subr.bf16.mxu0 %v1844_v23 }
 0x2b2   : > { %v1651_v48 = vadd.f32 %v1650_v39, %v1043_v1  ;;  %v1652_v26 = vpop.f32.mrb[91].mxu1  ;;  %2001 = vmatpush1.bf16.msra.mxu0 %v1843_v3  ;;  %v1779_v42 = vmax.f32 %v1647_v60, 0.0 }
 0x2b3   : > { %v1653_v55 = vadd.f32 %v1652_v26, %v1043_v1  ;;  %v1780_v46 = vmax.f32 %v1649_v37, 0.0  ;;  %v2120_v1 = vpop.permute.xlu0 %2119 }
 0x2b4   : > { %v1781_v31 = vmax.f32 %v1651_v48, 0.0 }
 0x2b5   : > { %v1782_v43 = vmax.f32 %v1653_v55, 0.0  ;;  %v3714_v55 = vpop.permute.xlu1 %2129 }
 0x2b6   : > { %v1845_v44 = vpack.c.bf16 %v1781_v31, %v1779_v42 }
 0x2b7   : > { %v1846_v11 = vpack.c.bf16 %v1782_v43, %v1780_v46 }
 0x2b9   : > { %2002 = vmatprep.subr.bf16.mxu0 %v1846_v11 }
 0x2ba   : > { %2003 = vmatpush1.bf16.msra.mxu0 %v1845_v44 }
 0x2bd   : > { %2005 = vmatmul.mubr.bf16.vlgmr.msra.gmra.mrb[52].mxu0 %v2752_v15 }
 0x2be   : > { %2014 = vmatprep.mubr.bf16.mxu0 %v2755_v45 }
 0x2c5   : > { %2015 = vmatmul.mubr.bf16.gmra.mrb[56].mxu0 %v2757_v47  ;;  %v3717_v47 = vpop.permute.xlu0 %2164 }
 0x390   : > { %v2006_v51 = vpop.f32.mrb[52].mxu0 }
 0x391   : > { %v2615_v58 = vadd.f32 %v2006_v51, %v1862_v13  ;;  %v2008_v19 = vpop.f32.mrb[53].mxu0 }
 0x392   : > { %v2616_v53 = vadd.f32 %v2008_v19, %v1862_v13  ;;  %v2010_v54 = vpop.f32.mrb[54].mxu0 }
 0x393   : > { %v2571_v41 = vmul.f32 -1.442695, %v2615_v58  ;;  %v2012_v56 = vpop.f32.mrb[55].mxu0  ;;  %v3685_v24 = vadd.f32 %v2010_v54, %v1867_v50 }
 0x394   : > { %v2572_v52 = vmul.f32 -1.442695, %v2616_v53  ;;  %v3690_v29 = vadd.f32 %v2012_v56, %v1867_v50 }
 0x395   : > { %2758 = vpow2.f32 %v2571_v41  ;;  %v2212_v4 = vsel %vm2191_vm2, %v3685_v24, -inf  ;;  %v2573_v60 = vmul.f32 -1.442695, %v3685_v24 }
 0x396   : > { %2760 = vpow2.f32 %v2572_v52  ;;  %v2213_v18 = vsel %vm2191_vm2, %v3690_v29, -inf  ;;  %v2574_v37 = vmul.f32 -1.442695, %v3690_v29 }
 0x397   : > { %2762 = vtanh.f32 %v2615_v58 }
 0x398   : > { %v2016_v38 = vpop.f32.mrb[56].mxu0 }
 0x399   : > { %v3693_v34 = vadd.f32 %v2016_v38, %v1872_v57  ;;  %v2018_v30 = vpop.f32.mrb[57].mxu0 }
 0x39a   : > { %v3695_v7 = vadd.f32 %v2018_v30, %v1872_v57  ;;  %v2020_v0 = vpop.f32.mrb[58].mxu0 }
 0x39b   : > { %v2214_v2 = vsel %vm2196_vm3, %v3693_v34, -inf  ;;  %v2621_v5 = vadd.f32 %v2020_v0, %v1877_v62  ;;  %v2022_v63 = vpop.f32.mrb[59].mxu0  ;;  %v2575_v48 = vmul.f32 -1.442695, %v3693_v34 }
 0x39c   : > { %v2220_v8 = vmax.f32 %v2214_v2, %v2212_v4  ;;  %v2215_v22 = vsel %vm2196_vm3, %v3695_v7, -inf  ;;  %v2622_v10 = vadd.f32 %v2022_v63, %v1877_v62  ;;  %v2576_v31 = vmul.f32 -1.442695, %v3695_v7  ;;  %v2160_v63 = vpop.permute.xlu0 %2159 }
 0x39d   : > { %v2229_v28 = vmax.f32 %v2215_v22, %v2213_v18  ;;  %v2577_v9 = vmul.f32 -1.442695, %v2621_v5 }
 0x39e   : > { %v2221_v49 = vrot.slane %v2220_v8, 4  ;;  %v2578_v20 = vmul.f32 -1.442695, %v2622_v10 }
 0x39f   : > { %v2759_v14 = vpop.eup %2758  ;;  %v2230_v17 = vrot.slane %v2229_v28, 4  ;;  %2764 = vpow2.f32 %v2577_v9 }
 0x3a0   : > { %v2761_v27 = vpop.eup %2760  ;;  %v2049_v32 = vadd.f32 1.0, %v2759_v14  ;;  %2766 = vtanh.f32 %v2616_v53  ;;  %v2222_v3 = vmax.f32 %v2220_v8, %v2221_v49  ;;  %v2103_v53 = vpop.permute.xlu1 %2102 }
 0x3a1   : > { %v2050_v16 = vadd.f32 1.0, %v2761_v27  ;;  %v2231_v23 = vmax.f32 %v2229_v28, %v2230_v17  ;;  %2768 = vpow2.f32 %v2578_v20  ;;  %v2763_v43 = vpop.eup %2762 }
 0x3a2   : > { %2770 = vrcp.f32 %v2049_v32  ;;  %v2223_v6 = vrot.slane %v2222_v3, 2  ;;  %v2137_v54 = vmul.f32 %v2763_v43, %v2120_v1 }
 0x3a3   : > { %2772 = vrcp.f32 %v2050_v16  ;;  %v2232_v36 = vrot.slane %v2231_v23, 2 }
 0x3a4   : > { %v2224_v39 = vmax.f32 %v2222_v3, %v2223_v6  ;;  %2774 = vpow2.f32 %v2573_v60  ;;  %v2135_v28 = vpop.permute.xlu1 %2134 }
 0x3a5   : > { %v2233_v26 = vmax.f32 %v2231_v23, %v2232_v36  ;;  %2776 = vpow2.f32 %v2574_v37 }
 0x3a6   : > { %v2225_v42 = vrot.slane %v2224_v39, 1  ;;  %2778 = vpow2.f32 %v2575_v48 }
 0x3a7   : > { %v2234_v46 = vrot.slane %v2233_v26, 1  ;;  %2780 = vpow2.f32 %v2576_v31 }
 0x3a8   : > { %v2226_v44 = vmax.f32 %v2224_v39, %v2225_v42  ;;  %2782 = vtanh.f32 %v2621_v5  ;;  %v3724_v16 = vpop.permute.xlu1 %2169 }
 0x3a9   : > { %v2765_v11 = vpop.eup %2764  ;;  %v2235_v15 = vmax.f32 %v2233_v26, %v2234_v46 }
 0x3aa   : > { %v2767_v45 = vpop.eup %2766  ;;  %v2238_v50 = vsub.f32 %v3685_v24, %v2226_v44  ;;  %v2240_v13 = vsub.f32 %v3693_v34, %v2226_v44  ;;  %v2055_v33 = vadd.f32 1.0, %v2765_v11 }
 0x3ab   : > { %v2769_v51 = vpop.eup %2768  ;;  %v2239_v25 = vsub.f32 %v3690_v29, %v2235_v15  ;;  %v2241_v58 = vsub.f32 %v3695_v7, %v2235_v15  ;;  %v2138_v0 = vmul.f32 %v2767_v45, %v2120_v1 }
 0x3ac   : > { %v2771_v19 = vpop.eup %2770  ;;  %v2248_v41 = vmul.f32 1.442695, %v2238_v50  ;;  %v2252_v56 = vmul.f32 1.442695, %v2240_v13  ;;  %2784 = vrcp.f32 %v2055_v33  ;;  %v2056_v4 = vadd.f32 1.0, %v2769_v51  ;;  %v2175_v45 = vpop.permute.xlu1 %2174 }
 0x3ad   : > { %v2773_v57 = vpop.eup %2772  ;;  %v2105_v52 = vmul.f32 %v2771_v19, %v2088_v12  ;;  %v2250_v38 = vmul.f32 1.442695, %v2239_v25  ;;  %v2254_v30 = vmul.f32 1.442695, %v2241_v58  ;;  %2786 = vtanh.f32 %v2622_v10 }
 0x3ae   : > { %v2106_v62 = vmul.f32 %v2773_v57, %v2088_v12  ;;  %2788 = vpow2.f32 %v2248_v41  ;;  %v2775_v18 = vpop.eup %2774 }
 0x3af   : > { %v2145_v2 = vadd.f32 %v2137_v54, %v2105_v52  ;;  %2790 = vpow2.f32 %v2252_v56  ;;  %v2777_v22 = vpop.eup %2776  ;;  %v2051_v27 = vadd.f32 1.0, %v2775_v18 }
 0x3b0   : > { %v2146_v5 = vadd.f32 %v2138_v0, %v2106_v62  ;;  %2792 = vpow2.f32 %v2250_v38  ;;  %v2779_v49 = vpop.eup %2778  ;;  %v2052_v23 = vadd.f32 1.0, %v2777_v22 }
 0x3b1   : > { %v2177_v8 = vadd.f32 %v2160_v63, %v2145_v2  ;;  %2794 = vpow2.f32 %v2254_v30  ;;  %v2781_v14 = vpop.eup %2780  ;;  %v2053_v37 = vadd.f32 1.0, %v2779_v49 }
 0x3b2   : > { %v2178_v9 = vadd.f32 %v2160_v63, %v2146_v5  ;;  %2796 = vrcp.f32 %v2056_v4  ;;  %v2783_v12 = vpop.eup %2782  ;;  %v2054_v46 = vadd.f32 1.0, %v2781_v14 }
 0x3b3   : > { %2798 = vtanh.f32 %v3685_v24  ;;  %v2143_v36 = vmul.f32 %v2783_v12, %v2135_v28 }
 0x3b4   : > { %v2603_v10 = vpack.c.bf16 %v2178_v9, %v2177_v8  ;;  %2800 = vtanh.f32 %v3690_v29 }
 0x3b5   : > { %2802 = vrcp.f32 %v2051_v27 }
 0x3b6   : > { %v2785_v17 = vpop.eup %2784  ;;  %2376 = vst [vmem:[%s3352_s29 + $0x40] sm:$0xff] %v2603_v10  ;;  %2804 = vrcp.f32 %v2052_v23 }
 0x3b7   : > { %v2787_v20 = vpop.eup %2786  ;;  %v2111_v32 = vmul.f32 %v2785_v17, %v2103_v53  ;;  %2806 = vrcp.f32 %v2053_v37 }
 0x3b8   : > { %v2789_v3 = vpop.eup %2788  ;;  %v2144_v15 = vmul.f32 %v2787_v20, %v2135_v28  ;;  %2808 = vrcp.f32 %v2054_v46 }
 0x3b9   : > { %v2791_v6 = vpop.eup %2790  ;;  %v3729_v60 = vsel %vm2191_vm2, %v2789_v3, 0.0  ;;  %v2151_v42 = vadd.f32 %v2143_v36, %v2111_v32  ;;  %2810 = vtanh.f32 %v3693_v34 }
 0x3ba   : > { %v2793_v1 = vpop.eup %2792  ;;  %v3734_v39 = vsel %vm2196_vm3, %v2791_v6, 0.0  ;;  %2812 = vtanh.f32 %v3695_v7 }
 0x3bb   : > { %v2795_v48 = vpop.eup %2794  ;;  %v2269_v26 = vadd.f32 %v3734_v39, %v3729_v60  ;;  %v3740_v24 = vsel %vm2191_vm2, %v2793_v1, 0.0  ;;  %v2183_v33 = vadd.f32 %v2175_v45, %v2151_v42 }
 0x3bc   : > { %v2797_v31 = vpop.eup %2796  ;;  %v3744_v29 = vsel %vm2196_vm3, %v2795_v48, 0.0 }
 0x3bd   : > { %v2271_v43 = vrot.slane %v2269_v26, 4  ;;  %v2278_v44 = vadd.f32 %v3744_v29, %v3740_v24  ;;  %v2112_v11 = vmul.f32 %v2797_v31, %v2103_v53  ;;  %v2799_v54 = vpop.eup %2798 }
 0x3be   : > { %v2801_v57 = vpop.eup %2800  ;;  %v2139_v9 = vmul.f32 %v2799_v54, %v3687_v61 }
 0x3bf   : > { %v2272_v50 = vadd.f32 %v2271_v43, %v2269_v26  ;;  %v2280_v13 = vrot.slane %v2278_v44, 4  ;;  %v2152_v51 = vadd.f32 %v2144_v15, %v2112_v11  ;;  %v2803_v52 = vpop.eup %2802  ;;  %v2140_v14 = vmul.f32 %v2801_v57, %v3687_v61 }
 0x3c0   : > { %v2805_v62 = vpop.eup %2804  ;;  %v2107_v18 = vmul.f32 %v2803_v52, %v3679_v35 }
 0x3c1   : > { %v2273_v25 = vrot.slane %v2272_v50, 2  ;;  %v2281_v58 = vadd.f32 %v2280_v13, %v2278_v44  ;;  %v2184_v19 = vadd.f32 %v2175_v45, %v2152_v51  ;;  %v2807_v2 = vpop.eup %2806  ;;  %v2108_v22 = vmul.f32 %v2805_v62, %v3679_v35 }
 0x3c2   : > { %v2809_v63 = vpop.eup %2808  ;;  %v2109_v8 = vmul.f32 %v2807_v2, %v3709_v21  ;;  %v2147_v12 = vadd.f32 %v2139_v9, %v2107_v18 }
 0x3c3   : > { %v2274_v41 = vadd.f32 %v2273_v25, %v2272_v50  ;;  %v2282_v56 = vrot.slane %v2281_v58, 2  ;;  %v2606_v53 = vpack.c.bf16 %v2184_v19, %v2183_v33  ;;  %v2811_v5 = vpop.eup %2810  ;;  %v2110_v28 = vmul.f32 %v2809_v63, %v3709_v21 }
 0x3c4   : > { %v2813_v7 = vpop.eup %2812  ;;  %v2141_v49 = vmul.f32 %v2811_v5, %v3714_v55  ;;  %v2148_v20 = vadd.f32 %v2140_v14, %v2108_v22  ;;  %v2179_v35 = vadd.f32 %v3717_v47, %v2147_v12 }
 0x3c5   : > { %v2275_v38 = vrot.slane %v2274_v41, 1  ;;  %v2283_v30 = vadd.f32 %v2282_v56, %v2281_v58  ;;  %2379 = vst [vmem:[%s3352_s29 + $0x58] sm:$0xff] %v2606_v53  ;;  %v2142_v10 = vmul.f32 %v2813_v7, %v3714_v55 }
 0x3c6   : > { %v2149_v17 = vadd.f32 %v2141_v49, %v2109_v8  ;;  %v2180_v23 = vadd.f32 %v3717_v47, %v2148_v20 }
 0x3c7   : > { %v2276_v0 = vadd.f32 %v2275_v38, %v2274_v41  ;;  %v2284_v4 = vrot.slane %v2283_v30, 1  ;;  %v2150_v27 = vadd.f32 %v2142_v10, %v2110_v28 }
 0x3c8   : > { %v2181_v21 = vadd.f32 %v3724_v16, %v2149_v17 }
 0x3c9   : > { %2814 = vrcp.f32 %v2276_v0  ;;  %v2285_v34 = vadd.f32 %v2284_v4, %v2283_v30  ;;  %v2182_v6 = vadd.f32 %v3724_v16, %v2150_v27 }
 0x3cb   : > { %2816 = vrcp.f32 %v2285_v34 }
 0x3d3   : > { %v2815_v32 = vpop.eup %2814 }
 0x3d4   : > { %v2290_v3 = vmul.f32 %v2815_v32, %v3729_v60  ;;  %v2292_v61 = vmul.f32 %v2815_v32, %v3734_v39 }
 0x3d5   : > { %v2817_v55 = vpop.eup %2816 }
 0x3d6   : > { %v2298_v36 = vsel %vm2191_vm2, %v2290_v3, %v2179_v35  ;;  %v2300_v1 = vsel %vm2196_vm3, %v2292_v61, %v2181_v21  ;;  %v2291_v37 = vmul.f32 %v2817_v55, %v3740_v24  ;;  %v2293_v60 = vmul.f32 %v2817_v55, %v3744_v29 }
 0x3d8   : > { %v2299_v47 = vsel %vm2191_vm2, %v2291_v37, %v2180_v23  ;;  %v2301_v16 = vsel %vm2196_vm3, %v2293_v60, %v2182_v6 }
 0x3d9   : > { %v2604_v39 = vpack.c.bf16 %v2299_v47, %v2298_v36  ;;  %v2605_v48 = vpack.c.bf16 %v2301_v16, %v2300_v1 }
 0x3db   : > { %2377 = vst [vmem:[%s3352_s29 + $0x48] sm:$0xff] %v2604_v39  ;;  %2378 = vst [vmem:[%s3352_s29 + $0x50] sm:$0xff] %v2605_v48 }
 0x3dc   : > { %2831 = shalt.err (!%p2828_p7)
}
 0x3dd   : > { %s2832_s29 = scalar_lea.hbm %s3783_s24, 1536  ;;  %s2836_s17 = scalar_lea.hbm %s3849_s10, 6144 }
 0x3de   : > { %p2833_p10 = scmp.ne.s32.totalorder %s3783_s24, %s2832_s29  ;;  %p2837_p13 = scmp.lt.u32.totalorder %s3783_s24, %s3849_s10 }
 0x3df   : > { %p2838_p0 = scmp.lt.u32.totalorder %s2836_s17, %s2832_s29  ;;  %p2840_p2 = scmp.lt.u32.totalorder %s2832_s29, %s3783_s24 }
 0x3e0   : > { %p2834_p11 = pnand %p2833_p10, %p3034_p8 }
 0x3e1   : > { %p2839_p1 = por %p2838_p0, %p2837_p13 }
 0x3e2   : > { %p2835_p12 = pneg %p2834_p11 }
 0x3e3   : > { %p2841_p3 = por %p2840_p2, %p2839_p1 }
 0x3e5   : > { %p2842_p4 = pnand %p2841_p3, %p2835_p12 }
 0x3e7   : > { %2845 = shalt.err (!%p2842_p4)
}
 0x3e8   : > { %s2916_s21 = smov 128   ;;  %s2917_s25 = smov 256  }
 0x3e9   : > { %s2918_s30 = smov 8  }
 0x3ea   : > { %2633 = dma.vmem_to_hbm [thread:$0]  (%p3034_p8), %s3774_s13, 1536, %s3783_s24, %s2381_s23, %s2916_s21, %s2917_s25, %s2918_s30  }
 0x3eb PF: > { %s3861_s11 = sld [smem:[#allocation6_spill]]  ;;  %p2639_p5 = scmp.ge.s32.totalorder %s2912_s20, 2 }
 0x3ed   : > { %p2636_p6 = pnand %p2639_p5, %p3038_p9 }
 0x3f1   : > { %s2411_s17 = sand.u32 1, %s3861_s11  }
 0x3f2   : > { %s2412_s29 = scalar_lea.sflag [#allocation4], %s2411_s17 }
 0x3f3   : > { %2879 = dma.done.wait (!%p2636_p6), %s2412_s29, 1536  }
 0x3f4   : > { %2881 = vsyncadd (!%p2636_p6), %s2412_s29, 4294965760  ;;  %s23_s20 = sadd.s32 1, %s2912_s20   ;;  %s3863_s27 = sld [smem:[#allocation7_spill]] }
 0x3f5   : > { %p20_p7 = scmp.ge.s32.totalorder %s23_s20, 6   ;;  %s3864_s28 = sld [smem:[#allocation8_spill]] }
 0x3f6   : > { %s3865_s13 = smov %s2888_s14  ;;  %s3866_s14 = smov %s2892_s15 }
 0x3f7   : > { %s3867_s15 = smov %s3046_s12  ;;  %s3868_s16 = smov %s2904_s18 }
 0x3f8   : > { %s3869_s17 = smov %s2908_s19  ;;  %22 = sbr.rel (!%p20_p7) target bundleno = 5 (0x5), region = 123 }
 0x3fa   : > { %s3870_s18 = smov %s3863_s27 }
 0x3fb   : > { %s3871_s19 = smov %s3864_s28 }
 0x3ff   :  { %2417 = vsyncpa [#allocation4], 1 }
 0x400   :  { %2419 = vsyncpa [#allocation4 + $0x1], 1 }

</bundles_post_ra>
